<compile_context>
chip_gen: v7x
topology: tpu7x:2x2x1
jax: 0.10.0
libtpu: 0.0.40
codegen_flags: <defaults>
</compile_context>

<pallas_src>
import functools
import math

import jax
import jax.numpy as jnp
import numpy as np
from jax import lax
from jax.experimental import pallas as pl
from jax.experimental.pallas import tpu as pltpu


def _mha_kernel(*refs, num_heads, dim_head, has_mask, mask_heads, mxu_dtype):
    """One (batch, query-tile) grid step; all heads handled in-body."""
    if has_mask:
        (q_ref, k_ref, v_ref, mask_ref,
         wq_ref, bq_ref, wk_ref, bk_ref, wv_ref, bv_ref,
         wo_ref, bo_ref,
         out_ref, attw_ref,
         k_scr, v_scr, ctx_scr) = refs
    else:
        (q_ref, k_ref, v_ref,
         wq_ref, bq_ref, wk_ref, bk_ref, wv_ref, bv_ref,
         wo_ref, bo_ref,
         out_ref, attw_ref,
         k_scr, v_scr, ctx_scr) = refs
        mask_ref = None

    def cast(a):
        return a.astype(mxu_dtype)

    # ---- K/V projection: once per batch element (q-tile axis is sequential).
    # Full-width (S,D)@(D,D) matmuls; results stay resident in VMEM scratch.
    @pl.when(pl.program_id(1) == 0)
    def _project_kv():
        x_k = k_ref[0]                                              # (S, D)
        x_v = v_ref[0]                                              # (S, D)
        k_scr[...] = jnp.dot(cast(x_k), wk_ref[...],
                             preferred_element_type=jnp.float32) + bk_ref[...]
        v_scr[...] = jnp.dot(cast(x_v), wv_ref[...],
                             preferred_element_type=jnp.float32) + bv_ref[...]

    # ---- Q projection for this query tile (scale already folded into Wq/bq).
    q_all = jnp.dot(cast(q_ref[0]), wq_ref[...],
                    preferred_element_type=jnp.float32) + bq_ref[...]   # (tq, D)

    # Mask bias shared by all heads (hoisted out of the head loop).
    mask_common = None
    if mask_ref is not None and mask_heads == 1:
        mask_common = mask_ref[0, 0]                                # (tq, S)

    # ---- Heads: static unroll, static column slices (no dynamic lane slicing).
    for h in range(num_heads):
        lo = h * dim_head
        hi = lo + dim_head
        qh = q_all[:, lo:hi]                                        # (tq, dh)
        kh = k_scr[:, lo:hi]                                        # (S, dh)
        vh = v_scr[:, lo:hi]                                        # (S, dh)

        # scores: contract the head dims directly (q @ k^T pattern).
        scores = lax.dot_general(cast(qh), cast(kh), (((1,), (1,)), ((), ())),
                                 preferred_element_type=jnp.float32)  # (tq, S)

        if mask_ref is not None:
            bias = mask_common if mask_common is not None else mask_ref[0, h]
            scores = scores + bias

        # Numerically-stable softmax along keys; divide -> reciprocal*mul.
        m = jnp.max(scores, axis=-1, keepdims=True)
        e = jnp.exp(scores - m)
        att = e * pl.reciprocal(jnp.sum(e, axis=-1, keepdims=True))   # (tq, S)

        attw_ref[0, h] = att.astype(attw_ref.dtype)

        # Per-head context written into the (tq, D) context scratch; the
        # output projection is deferred until all heads are done.
        ctx_scr[:, lo:hi] = jnp.dot(cast(att), cast(vh),
                                    preferred_element_type=jnp.float32)

    # ---- Deferred output projection: one full-depth (tq,D)@(D,D) matmul.
    out = jnp.dot(cast(ctx_scr[...]), wo_ref[...],
                  preferred_element_type=jnp.float32) + bo_ref[...]
    out_ref[0] = out.astype(out_ref.dtype)


def multi_head_attention(query, key, value, params, mask=None, *,
                         num_heads, q_tile=None, mxu_dtype=jnp.float32):
    """query/key/value: (B,T,D)/(B,S,D) f32. params: (D_in,D_out) weights and
    (1,D) biases (nn.Linear semantics, weights pre-transposed).
    Returns (out (B,T,D), att_w (B,H,T,S))."""
    B, T, D = query.shape
    S = key.shape[1]
    H = num_heads
    assert D % H == 0
    dh = D // H

    # Query tile: biggest of 256/128 that divides T, else the whole T
    # (block-shape rule: 2nd-to-last dim must be a multiple of 8 or the full
    # extent).
    if q_tile is None:
        for cand in (256, 128):
            if T % cand == 0:
                q_tile = cand
                break
        else:
            q_tile = T
    tq = q_tile
    assert T % tq == 0 and (tq == T or tq % 8 == 0)
    Q = T // tq

    # Host-side (one-time) prep: fold the softmax scale into the Q projection;
    # cast matmul weights to the MXU operand dtype (biases stay f32).
    scale = 1.0 / math.sqrt(float(dh))
    wq = (params["wq"] * scale).astype(mxu_dtype)
    bq = params["bq"] * scale
    wk = params["wk"].astype(mxu_dtype)
    bk = params["bk"]
    wv = params["wv"].astype(mxu_dtype)
    bv = params["bv"]
    wo = params["wo"].astype(mxu_dtype)
    bo = params["bo"]

    in_specs = [
        pl.BlockSpec((1, tq, D), lambda b, q: (b, q, 0)),   # query tile
        pl.BlockSpec((1, S, D), lambda b, q: (b, 0, 0)),    # key (resident per b)
        pl.BlockSpec((1, S, D), lambda b, q: (b, 0, 0)),    # value (resident per b)
    ]
    inputs = [query, key, value]

    has_mask = mask is not None
    mask_heads = 0
    if has_mask:
        Bm, Hm = mask.shape[0], mask.shape[1]
        assert Bm in (1, B) and Hm in (1, H), (
            f"mask batch/head dims must be 1 or full, got {mask.shape}")
        mask_heads = Hm
        # Pre-bake the additive -1e9 bias; broadcast only the sequence dims
        # host-side so mask HBM traffic stays O(Bm*Hm*T*S).
        mask_bias = jnp.broadcast_to(mask.astype(jnp.float32) * (-1e9),
                                     (Bm, Hm, T, S))
        b_full = (Bm == B)
        in_specs.append(
            pl.BlockSpec((1, Hm, tq, S),
                         lambda b, q, _bf=b_full: ((b if _bf else 0), 0, q, 0)))
        inputs.append(mask_bias)

    in_specs += [
        pl.BlockSpec((D, D), lambda b, q: (0, 0)),          # Wq (scaled)
        pl.BlockSpec((1, D), lambda b, q: (0, 0)),          # bq (scaled)
        pl.BlockSpec((D, D), lambda b, q: (0, 0)),          # Wk
        pl.BlockSpec((1, D), lambda b, q: (0, 0)),          # bk
        pl.BlockSpec((D, D), lambda b, q: (0, 0)),          # Wv
        pl.BlockSpec((1, D), lambda b, q: (0, 0)),          # bv
        pl.BlockSpec((D, D), lambda b, q: (0, 0)),          # Wo
        pl.BlockSpec((1, D), lambda b, q: (0, 0)),          # bo
    ]
    inputs += [wq, bq, wk, bk, wv, bv, wo, bo]

    kernel = functools.partial(
        _mha_kernel, num_heads=H, dim_head=dh, has_mask=has_mask,
        mask_heads=mask_heads, mxu_dtype=mxu_dtype)

    out, att_w = pl.pallas_call(
        kernel,
        out_shape=(
            jax.ShapeDtypeStruct((B, T, D), query.dtype),
            jax.ShapeDtypeStruct((B, H, T, S), jnp.float32),
        ),
        grid_spec=pltpu.PrefetchScalarGridSpec(
            num_scalar_prefetch=0,
            grid=(B, Q),
            in_specs=in_specs,
            out_specs=[
                pl.BlockSpec((1, tq, D), lambda b, q: (b, q, 0)),
                pl.BlockSpec((1, H, tq, S), lambda b, q: (b, 0, q, 0)),
            ],
            scratch_shapes=[
                pltpu.VMEM((S, D), jnp.float32),    # projected K (per batch elem)
                pltpu.VMEM((S, D), jnp.float32),    # projected V (per batch elem)
                pltpu.VMEM((tq, D), jnp.float32),   # per-tile context (all heads)
            ]),
        compiler_params=pltpu.CompilerParams(
            dimension_semantics=("parallel", "arbitrary"),
            vmem_limit_bytes=64 * 1024 * 1024),
    )(*inputs)
    return out, att_w


def _reference(query, key, value, params, mask, num_heads):
    B, T, D = query.shape
    dh = D // num_heads
    q = query @ params["wq"] + params["bq"]
    k = key @ params["wk"] + params["bk"]
    v = value @ params["wv"] + params["bv"]
    q = q.reshape(B, T, num_heads, dh).transpose(0, 2, 1, 3)
    k = k.reshape(B, -1, num_heads, dh).transpose(0, 2, 1, 3)
    v = v.reshape(B, -1, num_heads, dh).transpose(0, 2, 1, 3)
    scores = jnp.einsum("bhtd,bhsd->bhts", q, k) / math.sqrt(dh)
    if mask is not None:
        scores = scores + jnp.broadcast_to(mask, scores.shape) * (-1e9)
    att = jax.nn.softmax(scores, axis=-1)
    out = jnp.einsum("bhts,bhsd->bhtd", att, v)
    out = out.transpose(0, 2, 1, 3).reshape(B, T, D)
    out = out @ params["wo"] + params["bo"]
    return out, att


# TODO(synk): MultiHeadAttention.pad() (chunk-padding helper) is a host-side
# utility outside the forward pass and is not implemented as a kernel.
# TODO(synk): if att_w were not a required output, the key axis would also be
# tiled with a flash-style online softmax; the mandatory (B,H,T,S) writeback
# fixes the per-tile working set at O(tq*S) anyway.

if __name__ == "__main__":
    B, T, D, H = 2, 8, 32, 4

    key0 = jax.random.PRNGKey(0)
    ks = jax.random.split(key0, 12)

    # Deterministic parameter init (weights pre-transposed: (D_in, D_out)).
    scale = 1.0 / math.sqrt(D)
    params = {
        "wq": jax.random.uniform(ks[0], (D, D), jnp.float32, -scale, scale),
        "bq": jax.random.uniform(ks[1], (1, D), jnp.float32, -scale, scale),
        "wk": jax.random.uniform(ks[2], (D, D), jnp.float32, -scale, scale),
        "bk": jax.random.uniform(ks[3], (1, D), jnp.float32, -scale, scale),
        "wv": jax.random.uniform(ks[4], (D, D), jnp.float32, -scale, scale),
        "bv": jax.random.uniform(ks[5], (1, D), jnp.float32, -scale, scale),
        "wo": jax.random.uniform(ks[6], (D, D), jnp.float32, -scale, scale),
        "bo": jax.random.uniform(ks[7], (1, D), jnp.float32, -scale, scale),
    }

    query = jax.random.normal(ks[8], (B, T, D), jnp.float32)
    key_ = jax.random.normal(ks[9], (B, T, D), jnp.float32)
    value = jax.random.normal(ks[10], (B, T, D), jnp.float32)

    # Causal-style mask (1 = masked), shape (B, 1, T, T), broadcast over heads
    # inside the kernel (never materialized per-head in HBM).
    causal = jnp.triu(jnp.ones((T, T), jnp.float32), k=1)
    mask = jnp.broadcast_to(causal[None, None], (B, 1, T, T))

    # f32 MXU path, masked.
    out, att_w = multi_head_attention(query, key_, value, params, mask, num_heads=H)
    out = jax.block_until_ready(out)
    att_w = jax.block_until_ready(att_w)
    ref_out, ref_att = _reference(query, key_, value, params, mask, H)
    np.testing.assert_allclose(np.asarray(out), np.asarray(ref_out), rtol=2e-5, atol=2e-5)
    np.testing.assert_allclose(np.asarray(att_w), np.asarray(ref_att), rtol=2e-5, atol=2e-5)

    # f32 MXU path, mask=None.
    out2, att_w2 = multi_head_attention(query, key_, value, params, None, num_heads=H)
    out2 = jax.block_until_ready(out2)
    ref_out2, ref_att2 = _reference(query, key_, value, params, None, H)
    np.testing.assert_allclose(np.asarray(out2), np.asarray(ref_out2), rtol=2e-5, atol=2e-5)
    np.testing.assert_allclose(np.asarray(att_w2), np.asarray(ref_att2), rtol=2e-5, atol=2e-5)

    # bf16 MXU-operand path (f32 accumulation + f32 softmax stats), looser tol.
    out3, att_w3 = multi_head_attention(query, key_, value, params, mask,
                                        num_heads=H, mxu_dtype=jnp.bfloat16)
    out3 = jax.block_until_ready(out3)
    att_w3 = jax.block_until_ready(att_w3)
    np.testing.assert_allclose(np.asarray(out3), np.asarray(ref_out), rtol=5e-2, atol=5e-2)
    np.testing.assert_allclose(np.asarray(att_w3), np.asarray(ref_att), rtol=5e-2, atol=5e-2)

    print("KERNEL_OK")
</pallas_src>

<mosaic_0001>
module attributes {stable_mosaic.version = 11 : i64} {
  func.func @_mha_kernel(%arg0: i32, %arg1: i32, %arg2: memref<1x8x32xf32, #tpu.memory_space<vmem>>, %arg3: memref<1x8x32xf32, #tpu.memory_space<vmem>>, %arg4: memref<1x8x32xf32, #tpu.memory_space<vmem>>, %arg5: memref<1x1x8x8xf32, #tpu.memory_space<vmem>>, %arg6: memref<32x32xf32, #tpu.memory_space<vmem>>, %arg7: memref<1x32xf32, #tpu.memory_space<vmem>>, %arg8: memref<32x32xf32, #tpu.memory_space<vmem>>, %arg9: memref<1x32xf32, #tpu.memory_space<vmem>>, %arg10: memref<32x32xf32, #tpu.memory_space<vmem>>, %arg11: memref<1x32xf32, #tpu.memory_space<vmem>>, %arg12: memref<32x32xf32, #tpu.memory_space<vmem>>, %arg13: memref<1x32xf32, #tpu.memory_space<vmem>>, %arg14: memref<1x8x32xf32, #tpu.memory_space<vmem>>, %arg15: memref<1x4x8x8xf32, #tpu.memory_space<vmem>>, %arg16: memref<8x32xf32, #tpu.memory_space<vmem>>, %arg17: memref<8x32xf32, #tpu.memory_space<vmem>>, %arg18: memref<8x32xf32, #tpu.memory_space<vmem>>) attributes {dimension_semantics = [#tpu.dimension_semantics<parallel>, #tpu.dimension_semantics<arbitrary>], iteration_bounds = array<i64: 2, 1>, scalar_prefetch = 0 : i64, scratch_operands = 3 : i64, tpu.core_type = #tpu.core_type<tc>, window_params = [{transform_indices = @transform_0, window_bounds = array<i64: 1, 8, 32>}, {transform_indices = @transform_1, window_bounds = array<i64: 1, 8, 32>}, {transform_indices = @transform_2, window_bounds = array<i64: 1, 8, 32>}, {transform_indices = @transform_3, window_bounds = array<i64: 1, 1, 8, 8>}, {pipeline_mode = #tpu.pipeline_mode<synchronous>, transform_indices = @transform_4, window_bounds = array<i64: 32, 32>}, {pipeline_mode = #tpu.pipeline_mode<synchronous>, transform_indices = @transform_5, window_bounds = array<i64: 1, 32>}, {pipeline_mode = #tpu.pipeline_mode<synchronous>, transform_indices = @transform_6, window_bounds = array<i64: 32, 32>}, {pipeline_mode = #tpu.pipeline_mode<synchronous>, transform_indices = @transform_7, window_bounds = array<i64: 1, 32>}, {pipeline_mode = #tpu.pipeline_mode<synchronous>, transform_indices = @transform_8, window_bounds = array<i64: 32, 32>}, {pipeline_mode = #tpu.pipeline_mode<synchronous>, transform_indices = @transform_9, window_bounds = array<i64: 1, 32>}, {pipeline_mode = #tpu.pipeline_mode<synchronous>, transform_indices = @transform_10, window_bounds = array<i64: 32, 32>}, {pipeline_mode = #tpu.pipeline_mode<synchronous>, transform_indices = @transform_11, window_bounds = array<i64: 1, 32>}, {transform_indices = @transform_12, window_bounds = array<i64: 1, 8, 32>}, {transform_indices = @transform_13, window_bounds = array<i64: 1, 4, 8, 8>}]} {
    %c0_i32 = arith.constant 0 : i32
    %0 = arith.cmpi eq, %arg1, %c0_i32 : i32
    %1 = arith.extui %0 : i1 to i32
    %c0_i32_0 = arith.constant 0 : i32
    %2 = arith.cmpi ne, %1, %c0_i32_0 : i32
    scf.if %2 {
      %c0_71 = arith.constant 0 : index
      %c0_72 = arith.constant 0 : index
      %c0_73 = arith.constant 0 : index
      %101 = vector.load %arg3[%c0_71, %c0_72, %c0_73] : memref<1x8x32xf32, #tpu.memory_space<vmem>>, vector<1x8x32xf32>
      %102 = vector.shape_cast %101 : vector<1x8x32xf32> to vector<8x32xf32>
      %c0_74 = arith.constant 0 : index
      %c0_75 = arith.constant 0 : index
      %c0_76 = arith.constant 0 : index
      %103 = vector.load %arg4[%c0_74, %c0_75, %c0_76] : memref<1x8x32xf32, #tpu.memory_space<vmem>>, vector<1x8x32xf32>
      %104 = vector.shape_cast %103 : vector<1x8x32xf32> to vector<8x32xf32>
      %c0_77 = arith.constant 0 : index
      %c0_78 = arith.constant 0 : index
      %105 = vector.load %arg8[%c0_77, %c0_78] : memref<32x32xf32, #tpu.memory_space<vmem>>, vector<32x32xf32>
      %cst_79 = arith.constant dense<0.000000e+00> : vector<8x32xf32>
      %106 = tpu.matmul %102, %105, %cst_79 {dimension_numbers = #tpu.dot_dimension_numbers<[1], [0], [0], [1], [0, 0, 1, 1], [], []>} : vector<8x32xf32>, vector<32x32xf32>, vector<8x32xf32> -> vector<8x32xf32>
      %c0_80 = arith.constant 0 : index
      %c0_81 = arith.constant 0 : index
      %107 = vector.load %arg9[%c0_80, %c0_81] : memref<1x32xf32, #tpu.memory_space<vmem>>, vector<1x32xf32>
      %108 = vector.broadcast %107 : vector<1x32xf32> to vector<8x32xf32>
      %109 = arith.addf %106, %108 : vector<8x32xf32>
      %c0_82 = arith.constant 0 : index
      %c0_83 = arith.constant 0 : index
      %110 = vector.load %arg16[%c0_82, %c0_83] : memref<8x32xf32, #tpu.memory_space<vmem>>, vector<8x32xf32>
      tpu.vector_store %arg16[%c0_82, %c0_83], %109 {strides = array<i32>} : memref<8x32xf32, #tpu.memory_space<vmem>>, vector<8x32xf32>,
      %c0_84 = arith.constant 0 : index
      %c0_85 = arith.constant 0 : index
      %111 = vector.load %arg10[%c0_84, %c0_85] : memref<32x32xf32, #tpu.memory_space<vmem>>, vector<32x32xf32>
      %cst_86 = arith.constant dense<0.000000e+00> : vector<8x32xf32>
      %112 = tpu.matmul %104, %111, %cst_86 {dimension_numbers = #tpu.dot_dimension_numbers<[1], [0], [0], [1], [0, 0, 1, 1], [], []>} : vector<8x32xf32>, vector<32x32xf32>, vector<8x32xf32> -> vector<8x32xf32>
      %c0_87 = arith.constant 0 : index
      %c0_88 = arith.constant 0 : index
      %113 = vector.load %arg11[%c0_87, %c0_88] : memref<1x32xf32, #tpu.memory_space<vmem>>, vector<1x32xf32>
      %114 = vector.broadcast %113 : vector<1x32xf32> to vector<8x32xf32>
      %115 = arith.addf %112, %114 : vector<8x32xf32>
      %c0_89 = arith.constant 0 : index
      %c0_90 = arith.constant 0 : index
      %116 = vector.load %arg17[%c0_89, %c0_90] : memref<8x32xf32, #tpu.memory_space<vmem>>, vector<8x32xf32>
      tpu.vector_store %arg17[%c0_89, %c0_90], %115 {strides = array<i32>} : memref<8x32xf32, #tpu.memory_space<vmem>>, vector<8x32xf32>,
    } else {
    }
    %c0 = arith.constant 0 : index
    %c0_1 = arith.constant 0 : index
    %c0_2 = arith.constant 0 : index
    %3 = vector.load %arg2[%c0, %c0_1, %c0_2] : memref<1x8x32xf32, #tpu.memory_space<vmem>>, vector<1x8x32xf32>
    %4 = vector.shape_cast %3 : vector<1x8x32xf32> to vector<8x32xf32>
    %c0_3 = arith.constant 0 : index
    %c0_4 = arith.constant 0 : index
    %5 = vector.load %arg6[%c0_3, %c0_4] : memref<32x32xf32, #tpu.memory_space<vmem>>, vector<32x32xf32>
    %cst = arith.constant dense<0.000000e+00> : vector<8x32xf32>
    %6 = tpu.matmul %4, %5, %cst {dimension_numbers = #tpu.dot_dimension_numbers<[1], [0], [0], [1], [0, 0, 1, 1], [], []>} : vector<8x32xf32>, vector<32x32xf32>, vector<8x32xf32> -> vector<8x32xf32>
    %c0_5 = arith.constant 0 : index
    %c0_6 = arith.constant 0 : index
    %7 = vector.load %arg7[%c0_5, %c0_6] : memref<1x32xf32, #tpu.memory_space<vmem>>, vector<1x32xf32>
    %8 = vector.broadcast %7 : vector<1x32xf32> to vector<8x32xf32>
    %9 = arith.addf %6, %8 : vector<8x32xf32>
    %c0_7 = arith.constant 0 : index
    %c0_8 = arith.constant 0 : index
    %c0_9 = arith.constant 0 : index
    %c0_10 = arith.constant 0 : index
    %10 = vector.load %arg5[%c0_7, %c0_8, %c0_9, %c0_10] : memref<1x1x8x8xf32, #tpu.memory_space<vmem>>, vector<1x1x8x8xf32>
    %11 = vector.shape_cast %10 : vector<1x1x8x8xf32> to vector<8x8xf32>
    %12 = vector.extract_strided_slice %9 {offsets = [0, 0], sizes = [8, 8], strides = [1, 1]} : vector<8x32xf32> to vector<8x8xf32>
    %c0_11 = arith.constant 0 : index
    %c0_12 = arith.constant 0 : index
    %13 = vector.load %arg16[%c0_11, %c0_12] : memref<8x32xf32, #tpu.memory_space<vmem>>, vector<8x8xf32>
    %c0_13 = arith.constant 0 : index
    %c0_14 = arith.constant 0 : index
    %14 = vector.load %arg17[%c0_13, %c0_14] : memref<8x32xf32, #tpu.memory_space<vmem>>, vector<8x8xf32>
    %cst_15 = arith.constant dense<0.000000e+00> : vector<8x8xf32>
    %15 = tpu.matmul %12, %13, %cst_15 {dimension_numbers = #tpu.dot_dimension_numbers<[1], [1], [0], [0], [0, 0, 1, 0], [], []>} : vector<8x8xf32>, vector<8x8xf32>, vector<8x8xf32> -> vector<8x8xf32>
    %16 = arith.addf %15, %11 : vector<8x8xf32>
    %cst_16 = arith.constant dense<0xFF800000> : vector<8xf32>
    %17 = vector.multi_reduction <maximumf>, %16, %cst_16 [1] : vector<8x8xf32> to vector<8xf32>
    %18 = vector.shape_cast %17 : vector<8xf32> to vector<8x1xf32>
    %19 = vector.broadcast %18 : vector<8x1xf32> to vector<8x8xf32>
    %20 = arith.subf %16, %19 : vector<8x8xf32>
    %21 = math.exp %20 : vector<8x8xf32>
    %cst_17 = arith.constant dense<0.000000e+00> : vector<8xf32>
    %22 = vector.multi_reduction <add>, %21, %cst_17 [1] : vector<8x8xf32> to vector<8xf32>
    %23 = vector.shape_cast %22 : vector<8xf32> to vector<8x1xf32>
    %24 = tpu.reciprocal %23 : vector<8x1xf32> -> vector<8x1xf32>
    %25 = vector.broadcast %24 : vector<8x1xf32> to vector<8x8xf32>
    %26 = arith.mulf %21, %25 : vector<8x8xf32>
    %c0_18 = arith.constant 0 : index
    %c0_19 = arith.constant 0 : index
    %c0_20 = arith.constant 0 : index
    %c0_21 = arith.constant 0 : index
    %27 = vector.load %arg15[%c0_18, %c0_19, %c0_20, %c0_21] : memref<1x4x8x8xf32, #tpu.memory_space<vmem>>, vector<1x1x8x8xf32>
    %28 = vector.shape_cast %27 : vector<1x1x8x8xf32> to vector<8x8xf32>
    %29 = vector.shape_cast %26 : vector<8x8xf32> to vector<1x1x8x8xf32>
    tpu.vector_store %arg15[%c0_18, %c0_19, %c0_20, %c0_21], %29 {strides = array<i32>} : memref<1x4x8x8xf32, #tpu.memory_space<vmem>>, vector<1x1x8x8xf32>,
    %cst_22 = arith.constant dense<0.000000e+00> : vector<8x8xf32>
    %30 = tpu.matmul %26, %14, %cst_22 {dimension_numbers = #tpu.dot_dimension_numbers<[1], [0], [0], [1], [0, 0, 1, 1], [], []>} : vector<8x8xf32>, vector<8x8xf32>, vector<8x8xf32> -> vector<8x8xf32>
    %c0_23 = arith.constant 0 : index
    %c0_24 = arith.constant 0 : index
    %31 = vector.load %arg18[%c0_23, %c0_24] : memref<8x32xf32, #tpu.memory_space<vmem>>, vector<8x8xf32>
    tpu.vector_store %arg18[%c0_23, %c0_24], %30 {strides = array<i32>} : memref<8x32xf32, #tpu.memory_space<vmem>>, vector<8x8xf32>,
    %32 = vector.extract_strided_slice %9 {offsets = [0, 8], sizes = [8, 8], strides = [1, 1]} : vector<8x32xf32> to vector<8x8xf32>
    %c0_25 = arith.constant 0 : index
    %c8 = arith.constant 8 : index
    %33 = vector.load %arg16[%c0_25, %c8] : memref<8x32xf32, #tpu.memory_space<vmem>>, vector<8x8xf32>
    %c0_26 = arith.constant 0 : index
    %c8_27 = arith.constant 8 : index
    %34 = vector.load %arg17[%c0_26, %c8_27] : memref<8x32xf32, #tpu.memory_space<vmem>>, vector<8x8xf32>
    %cst_28 = arith.constant dense<0.000000e+00> : vector<8x8xf32>
    %35 = tpu.matmul %32, %33, %cst_28 {dimension_numbers = #tpu.dot_dimension_numbers<[1], [1], [0], [0], [0, 0, 1, 0], [], []>} : vector<8x8xf32>, vector<8x8xf32>, vector<8x8xf32> -> vector<8x8xf32>
    %36 = arith.addf %35, %11 : vector<8x8xf32>
    %cst_29 = arith.constant dense<0xFF800000> : vector<8xf32>
    %37 = vector.multi_reduction <maximumf>, %36, %cst_29 [1] : vector<8x8xf32> to vector<8xf32>
    %38 = vector.shape_cast %37 : vector<8xf32> to vector<8x1xf32>
    %39 = vector.broadcast %38 : vector<8x1xf32> to vector<8x8xf32>
    %40 = arith.subf %36, %39 : vector<8x8xf32>
    %41 = math.exp %40 : vector<8x8xf32>
    %cst_30 = arith.constant dense<0.000000e+00> : vector<8xf32>
    %42 = vector.multi_reduction <add>, %41, %cst_30 [1] : vector<8x8xf32> to vector<8xf32>
    %43 = vector.shape_cast %42 : vector<8xf32> to vector<8x1xf32>
    %44 = tpu.reciprocal %43 : vector<8x1xf32> -> vector<8x1xf32>
    %45 = vector.broadcast %44 : vector<8x1xf32> to vector<8x8xf32>
    %46 = arith.mulf %41, %45 : vector<8x8xf32>
    %c0_31 = arith.constant 0 : index
    %c1 = arith.constant 1 : index
    %c0_32 = arith.constant 0 : index
    %c0_33 = arith.constant 0 : index
    %47 = vector.load %arg15[%c0_31, %c1, %c0_32, %c0_33] : memref<1x4x8x8xf32, #tpu.memory_space<vmem>>, vector<1x1x8x8xf32>
    %48 = vector.shape_cast %47 : vector<1x1x8x8xf32> to vector<8x8xf32>
    %49 = vector.shape_cast %46 : vector<8x8xf32> to vector<1x1x8x8xf32>
    tpu.vector_store %arg15[%c0_31, %c1, %c0_32, %c0_33], %49 {strides = array<i32>} : memref<1x4x8x8xf32, #tpu.memory_space<vmem>>, vector<1x1x8x8xf32>,
    %cst_34 = arith.constant dense<0.000000e+00> : vector<8x8xf32>
    %50 = tpu.matmul %46, %34, %cst_34 {dimension_numbers = #tpu.dot_dimension_numbers<[1], [0], [0], [1], [0, 0, 1, 1], [], []>} : vector<8x8xf32>, vector<8x8xf32>, vector<8x8xf32> -> vector<8x8xf32>
    %c0_35 = arith.constant 0 : index
    %c8_36 = arith.constant 8 : index
    %51 = vector.load %arg18[%c0_35, %c8_36] : memref<8x32xf32, #tpu.memory_space<vmem>>, vector<8x8xf32>
    tpu.vector_store %arg18[%c0_35, %c8_36], %50 {strides = array<i32>} : memref<8x32xf32, #tpu.memory_space<vmem>>, vector<8x8xf32>,
    %52 = vector.extract_strided_slice %9 {offsets = [0, 16], sizes = [8, 8], strides = [1, 1]} : vector<8x32xf32> to vector<8x8xf32>
    %c0_37 = arith.constant 0 : index
    %c16 = arith.constant 16 : index
    %53 = vector.load %arg16[%c0_37, %c16] : memref<8x32xf32, #tpu.memory_space<vmem>>, vector<8x8xf32>
    %c0_38 = arith.constant 0 : index
    %c16_39 = arith.constant 16 : index
    %54 = vector.load %arg17[%c0_38, %c16_39] : memref<8x32xf32, #tpu.memory_space<vmem>>, vector<8x8xf32>
    %cst_40 = arith.constant dense<0.000000e+00> : vector<8x8xf32>
    %55 = tpu.matmul %52, %53, %cst_40 {dimension_numbers = #tpu.dot_dimension_numbers<[1], [1], [0], [0], [0, 0, 1, 0], [], []>} : vector<8x8xf32>, vector<8x8xf32>, vector<8x8xf32> -> vector<8x8xf32>
    %56 = arith.addf %55, %11 : vector<8x8xf32>
    %cst_41 = arith.constant dense<0xFF800000> : vector<8xf32>
    %57 = vector.multi_reduction <maximumf>, %56, %cst_41 [1] : vector<8x8xf32> to vector<8xf32>
    %58 = vector.shape_cast %57 : vector<8xf32> to vector<8x1xf32>
    %59 = vector.broadcast %58 : vector<8x1xf32> to vector<8x8xf32>
    %60 = arith.subf %56, %59 : vector<8x8xf32>
    %61 = math.exp %60 : vector<8x8xf32>
    %cst_42 = arith.constant dense<0.000000e+00> : vector<8xf32>
    %62 = vector.multi_reduction <add>, %61, %cst_42 [1] : vector<8x8xf32> to vector<8xf32>
    %63 = vector.shape_cast %62 : vector<8xf32> to vector<8x1xf32>
    %64 = tpu.reciprocal %63 : vector<8x1xf32> -> vector<8x1xf32>
    %65 = vector.broadcast %64 : vector<8x1xf32> to vector<8x8xf32>
    %66 = arith.mulf %61, %65 : vector<8x8xf32>
    %c0_43 = arith.constant 0 : index
    %c2 = arith.constant 2 : index
    %c0_44 = arith.constant 0 : index
    %c0_45 = arith.constant 0 : index
    %67 = vector.load %arg15[%c0_43, %c2, %c0_44, %c0_45] : memref<1x4x8x8xf32, #tpu.memory_space<vmem>>, vector<1x1x8x8xf32>
    %68 = vector.shape_cast %67 : vector<1x1x8x8xf32> to vector<8x8xf32>
    %69 = vector.shape_cast %66 : vector<8x8xf32> to vector<1x1x8x8xf32>
    tpu.vector_store %arg15[%c0_43, %c2, %c0_44, %c0_45], %69 {strides = array<i32>} : memref<1x4x8x8xf32, #tpu.memory_space<vmem>>, vector<1x1x8x8xf32>,
    %cst_46 = arith.constant dense<0.000000e+00> : vector<8x8xf32>
    %70 = tpu.matmul %66, %54, %cst_46 {dimension_numbers = #tpu.dot_dimension_numbers<[1], [0], [0], [1], [0, 0, 1, 1], [], []>} : vector<8x8xf32>, vector<8x8xf32>, vector<8x8xf32> -> vector<8x8xf32>
    %c0_47 = arith.constant 0 : index
    %c16_48 = arith.constant 16 : index
    %71 = vector.load %arg18[%c0_47, %c16_48] : memref<8x32xf32, #tpu.memory_space<vmem>>, vector<8x8xf32>
    tpu.vector_store %arg18[%c0_47, %c16_48], %70 {strides = array<i32>} : memref<8x32xf32, #tpu.memory_space<vmem>>, vector<8x8xf32>,
    %72 = vector.extract_strided_slice %9 {offsets = [0, 24], sizes = [8, 8], strides = [1, 1]} : vector<8x32xf32> to vector<8x8xf32>
    %c0_49 = arith.constant 0 : index
    %c24 = arith.constant 24 : index
    %73 = vector.load %arg16[%c0_49, %c24] : memref<8x32xf32, #tpu.memory_space<vmem>>, vector<8x8xf32>
    %c0_50 = arith.constant 0 : index
    %c24_51 = arith.constant 24 : index
    %74 = vector.load %arg17[%c0_50, %c24_51] : memref<8x32xf32, #tpu.memory_space<vmem>>, vector<8x8xf32>
    %cst_52 = arith.constant dense<0.000000e+00> : vector<8x8xf32>
    %75 = tpu.matmul %72, %73, %cst_52 {dimension_numbers = #tpu.dot_dimension_numbers<[1], [1], [0], [0], [0, 0, 1, 0], [], []>} : vector<8x8xf32>, vector<8x8xf32>, vector<8x8xf32> -> vector<8x8xf32>
    %76 = arith.addf %75, %11 : vector<8x8xf32>
    %cst_53 = arith.constant dense<0xFF800000> : vector<8xf32>
    %77 = vector.multi_reduction <maximumf>, %76, %cst_53 [1] : vector<8x8xf32> to vector<8xf32>
    %78 = vector.shape_cast %77 : vector<8xf32> to vector<8x1xf32>
    %79 = vector.broadcast %78 : vector<8x1xf32> to vector<8x8xf32>
    %80 = arith.subf %76, %79 : vector<8x8xf32>
    %81 = math.exp %80 : vector<8x8xf32>
    %cst_54 = arith.constant dense<0.000000e+00> : vector<8xf32>
    %82 = vector.multi_reduction <add>, %81, %cst_54 [1] : vector<8x8xf32> to vector<8xf32>
    %83 = vector.shape_cast %82 : vector<8xf32> to vector<8x1xf32>
    %84 = tpu.reciprocal %83 : vector<8x1xf32> -> vector<8x1xf32>
    %85 = vector.broadcast %84 : vector<8x1xf32> to vector<8x8xf32>
    %86 = arith.mulf %81, %85 : vector<8x8xf32>
    %c0_55 = arith.constant 0 : index
    %c3 = arith.constant 3 : index
    %c0_56 = arith.constant 0 : index
    %c0_57 = arith.constant 0 : index
    %87 = vector.load %arg15[%c0_55, %c3, %c0_56, %c0_57] : memref<1x4x8x8xf32, #tpu.memory_space<vmem>>, vector<1x1x8x8xf32>
    %88 = vector.shape_cast %87 : vector<1x1x8x8xf32> to vector<8x8xf32>
    %89 = vector.shape_cast %86 : vector<8x8xf32> to vector<1x1x8x8xf32>
    tpu.vector_store %arg15[%c0_55, %c3, %c0_56, %c0_57], %89 {strides = array<i32>} : memref<1x4x8x8xf32, #tpu.memory_space<vmem>>, vector<1x1x8x8xf32>,
    %cst_58 = arith.constant dense<0.000000e+00> : vector<8x8xf32>
    %90 = tpu.matmul %86, %74, %cst_58 {dimension_numbers = #tpu.dot_dimension_numbers<[1], [0], [0], [1], [0, 0, 1, 1], [], []>} : vector<8x8xf32>, vector<8x8xf32>, vector<8x8xf32> -> vector<8x8xf32>
    %c0_59 = arith.constant 0 : index
    %c24_60 = arith.constant 24 : index
    %91 = vector.load %arg18[%c0_59, %c24_60] : memref<8x32xf32, #tpu.memory_space<vmem>>, vector<8x8xf32>
    tpu.vector_store %arg18[%c0_59, %c24_60], %90 {strides = array<i32>} : memref<8x32xf32, #tpu.memory_space<vmem>>, vector<8x8xf32>,
    %c0_61 = arith.constant 0 : index
    %c0_62 = arith.constant 0 : index
    %92 = vector.load %arg18[%c0_61, %c0_62] : memref<8x32xf32, #tpu.memory_space<vmem>>, vector<8x32xf32>
    %c0_63 = arith.constant 0 : index
    %c0_64 = arith.constant 0 : index
    %93 = vector.load %arg12[%c0_63, %c0_64] : memref<32x32xf32, #tpu.memory_space<vmem>>, vector<32x32xf32>
    %cst_65 = arith.constant dense<0.000000e+00> : vector<8x32xf32>
    %94 = tpu.matmul %92, %93, %cst_65 {dimension_numbers = #tpu.dot_dimension_numbers<[1], [0], [0], [1], [0, 0, 1, 1], [], []>} : vector<8x32xf32>, vector<32x32xf32>, vector<8x32xf32> -> vector<8x32xf32>
    %c0_66 = arith.constant 0 : index
    %c0_67 = arith.constant 0 : index
    %95 = vector.load %arg13[%c0_66, %c0_67] : memref<1x32xf32, #tpu.memory_space<vmem>>, vector<1x32xf32>
    %96 = vector.broadcast %95 : vector<1x32xf32> to vector<8x32xf32>
    %97 = arith.addf %94, %96 : vector<8x32xf32>
    %c0_68 = arith.constant 0 : index
    %c0_69 = arith.constant 0 : index
    %c0_70 = arith.constant 0 : index
    %98 = vector.load %arg14[%c0_68, %c0_69, %c0_70] : memref<1x8x32xf32, #tpu.memory_space<vmem>>, vector<1x8x32xf32>
    %99 = vector.shape_cast %98 : vector<1x8x32xf32> to vector<8x32xf32>
    %100 = vector.shape_cast %97 : vector<8x32xf32> to vector<1x8x32xf32>
    tpu.vector_store %arg14[%c0_68, %c0_69, %c0_70], %100 {strides = array<i32>} : memref<1x8x32xf32, #tpu.memory_space<vmem>>, vector<1x8x32xf32>,
    return
  }
  func.func @transform_0(%arg0: i32, %arg1: i32) -> (i32, i32, i32) {
    %c0_i32 = arith.constant 0 : i32
    %c0_i32_0 = arith.constant 0 : i32
    return %arg0, %arg1, %c0_i32 : i32, i32, i32
  }
  func.func @transform_1(%arg0: i32, %arg1: i32) -> (i32, i32, i32) {
    %c0_i32 = arith.constant 0 : i32
    %c0_i32_0 = arith.constant 0 : i32
    %c0_i32_1 = arith.constant 0 : i32
    return %arg0, %c0_i32, %c0_i32_0 : i32, i32, i32
  }
  func.func @transform_2(%arg0: i32, %arg1: i32) -> (i32, i32, i32) {
    %c0_i32 = arith.constant 0 : i32
    %c0_i32_0 = arith.constant 0 : i32
    %c0_i32_1 = arith.constant 0 : i32
    return %arg0, %c0_i32, %c0_i32_0 : i32, i32, i32
  }
  func.func @transform_3(%arg0: i32, %arg1: i32) -> (i32, i32, i32, i32) {
    %c0_i32 = arith.constant 0 : i32
    %c0_i32_0 = arith.constant 0 : i32
    %c0_i32_1 = arith.constant 0 : i32
    return %arg0, %c0_i32, %arg1, %c0_i32_0 : i32, i32, i32, i32
  }
  func.func @transform_4(%arg0: i32, %arg1: i32) -> (i32, i32) {
    %c0_i32 = arith.constant 0 : i32
    %c0_i32_0 = arith.constant 0 : i32
    %c0_i32_1 = arith.constant 0 : i32
    return %c0_i32, %c0_i32_0 : i32, i32
  }
  func.func @transform_5(%arg0: i32, %arg1: i32) -> (i32, i32) {
    %c0_i32 = arith.constant 0 : i32
    %c0_i32_0 = arith.constant 0 : i32
    %c0_i32_1 = arith.constant 0 : i32
    return %c0_i32, %c0_i32_0 : i32, i32
  }
  func.func @transform_6(%arg0: i32, %arg1: i32) -> (i32, i32) {
    %c0_i32 = arith.constant 0 : i32
    %c0_i32_0 = arith.constant 0 : i32
    %c0_i32_1 = arith.constant 0 : i32
    return %c0_i32, %c0_i32_0 : i32, i32
  }
  func.func @transform_7(%arg0: i32, %arg1: i32) -> (i32, i32) {
    %c0_i32 = arith.constant 0 : i32
    %c0_i32_0 = arith.constant 0 : i32
    %c0_i32_1 = arith.constant 0 : i32
    return %c0_i32, %c0_i32_0 : i32, i32
  }
  func.func @transform_8(%arg0: i32, %arg1: i32) -> (i32, i32) {
    %c0_i32 = arith.constant 0 : i32
    %c0_i32_0 = arith.constant 0 : i32
    %c0_i32_1 = arith.constant 0 : i32
    return %c0_i32, %c0_i32_0 : i32, i32
  }
  func.func @transform_9(%arg0: i32, %arg1: i32) -> (i32, i32) {
    %c0_i32 = arith.constant 0 : i32
    %c0_i32_0 = arith.constant 0 : i32
    %c0_i32_1 = arith.constant 0 : i32
    return %c0_i32, %c0_i32_0 : i32, i32
  }
  func.func @transform_10(%arg0: i32, %arg1: i32) -> (i32, i32) {
    %c0_i32 = arith.constant 0 : i32
    %c0_i32_0 = arith.constant 0 : i32
    %c0_i32_1 = arith.constant 0 : i32
    return %c0_i32, %c0_i32_0 : i32, i32
  }
  func.func @transform_11(%arg0: i32, %arg1: i32) -> (i32, i32) {
    %c0_i32 = arith.constant 0 : i32
    %c0_i32_0 = arith.constant 0 : i32
    %c0_i32_1 = arith.constant 0 : i32
    return %c0_i32, %c0_i32_0 : i32, i32
  }
  func.func @transform_12(%arg0: i32, %arg1: i32) -> (i32, i32, i32) {
    %c0_i32 = arith.constant 0 : i32
    %c0_i32_0 = arith.constant 0 : i32
    return %arg0, %arg1, %c0_i32 : i32, i32, i32
  }
  func.func @transform_13(%arg0: i32, %arg1: i32) -> (i32, i32, i32, i32) {
    %c0_i32 = arith.constant 0 : i32
    %c0_i32_0 = arith.constant 0 : i32
    %c0_i32_1 = arith.constant 0 : i32
    return %arg0, %c0_i32, %arg1, %c0_i32_0 : i32, i32, i32, i32
  }
}

</mosaic_0001>

<bundles_post_ra>
// kernel: tpu_custom_call.1
= control target key start
LH: loop header
LB: loop body
LE: loop exit
PB: predicated region body
PF: predicated region fallthrough
CT: control target
= control target key end

     0   :  { %s3679_s0 = inlined_call_operand.hbm [shape: f32[2,8,32], index: 0, kind: input, shape index: {}]   ;;  %s3680_s1 = inlined_call_operand.hbm [shape: f32[2,8,32], index: 1, kind: input, shape index: {}]   ;;  %s3681_s2 = inlined_call_operand.hbm [shape: f32[2,8,32], index: 2, kind: input, shape index: {}]   ;;  %s3682_s3 = inlined_call_operand.hbm [shape: f32[2,1,8,8], index: 3, kind: input, shape index: {}]   ;;  %s3683_s4 = inlined_call_operand.hbm [shape: f32[32,32], index: 4, kind: input, shape index: {}]   ;;  %s3684_s5 = inlined_call_operand.hbm [shape: f32[1,32], index: 5, kind: input, shape index: {}]   ;;  %s3685_s6 = inlined_call_operand.hbm [shape: f32[32,32], index: 6, kind: input, shape index: {}]   ;;  %s3686_s7 = inlined_call_operand.hbm [shape: f32[1,32], index: 7, kind: input, shape index: {}]   ;;  %s3687_s8 = inlined_call_operand.hbm [shape: f32[32,32], index: 8, kind: input, shape index: {}]   ;;  %s3688_s9 = inlined_call_operand.hbm [shape: f32[1,32], index: 9, kind: input, shape index: {}]   ;;  %s3689_s10 = inlined_call_operand.hbm [shape: f32[32,32], index: 10, kind: input, shape index: {}]   ;;  %s3690_s11 = inlined_call_operand.hbm [shape: f32[1,32], index: 11, kind: input, shape index: {}]   ;;  %s3691_s12 = inlined_call_operand.hbm [shape: f32[2,8,32], index: 12, kind: output, shape index: {0}]   ;;  %s3692_s13 = inlined_call_operand.hbm [shape: f32[2,4,8,8], index: 13, kind: output, shape index: {1}]  }
   0x1   :  { %3721 = sst [smem:[#allocation44_spill]] %s3679_s0 }
   0x2   :  { %3722 = sst [smem:[#allocation45_spill]] %s3680_s1 }
   0x3   :  { %3723 = sst [smem:[#allocation46_spill]] %s3681_s2 }
   0x4   :  { %3724 = sst [smem:[#allocation47_spill]] %s3682_s3 }
   0x5   :  { %3725 = sst [smem:[#allocation48_spill]] %s3683_s4 }
   0x6   :  { %3726 = sst [smem:[#allocation49_spill]] %s3684_s5 }
   0x7   :  { %3727 = sst [smem:[#allocation50_spill]] %s3685_s6 }
   0x8   :  { %3728 = sst [smem:[#allocation51_spill]] %s3686_s7 }
   0x9   :  { %3729 = sst [smem:[#allocation52_spill]] %s3688_s9 }
   0xa   :  { %3730 = sst [smem:[#allocation53_spill]] %s3691_s12 }
   0xb   :  { %3731 = sst [smem:[#allocation54_spill]] %s3692_s13 }
   0xc   :  { %19 = vsyncpa [#allocation6], 0 }
   0xd   :  { %21 = vsyncpa [#allocation6 + $0x1], 0 }
   0xe   :  { %22 = vsyncpa [#allocation9], 0 }
   0xf   :  { %24 = vsyncpa [#allocation9 + $0x1], 0 }
  0x10   :  { %25 = vsyncpa [#allocation12], 0 }
  0x11   :  { %27 = vsyncpa [#allocation12 + $0x1], 0 }
  0x12   :  { %28 = vsyncpa [#allocation15], 0 }
  0x13   :  { %29 = vsyncpa [#allocation18], 0 }
  0x14   :  { %30 = vsyncpa [#allocation21], 0 }
  0x15   :  { %31 = vsyncpa [#allocation24], 0 }
  0x16   :  { %32 = vsyncpa [#allocation7], 0 }
  0x17   :  { %34 = vsyncpa [#allocation7 + $0x1], 0 }
  0x18   :  { %35 = vsyncpa [#allocation27], 0 }
  0x19   :  { %37 = vsyncpa [#allocation27 + $0x1], 0  ;;  %s3030_s25 = smov 0   ;;  %s3032_s26 = smov 0  }
  0x1a   :  { %s3034_s27 = smov 0   ;;  %s3036_s28 = smov 0  }
  0x1b   :  { %s3038_s29 = smov 0   ;;  %s3040_s30 = smov 0  }
  0x1c LB: > { %3732 = sst [smem:[#allocation38_spill]] %s2924_s28  ;;  %s3061_s14 = sadd.s32 4294967295, %s2932_s30   ;;  %s2932_s30 = sphi %s3040_s30, %s43_s30   ;;  %s2928_s29 = sphi %s3038_s29, %s3790_s29   ;;  %s2924_s28 = sphi %s3036_s28, %s3789_s28   ;;  %s2920_s27 = sphi %s3034_s27, %s3793_s27   ;;  %s2916_s26 = sphi %s3032_s26, %s3792_s26   ;;  %s2912_s25 = sphi %s3030_s25, %s3791_s25  }
  0x1d   : > { %3733 = sst [smem:[#allocation39_spill]] %s2928_s29  ;;  %p2047_p0 = scmp.ge.s32.totalorder %s2932_s30, 1 }
  0x1e   : > { %p3700_p1 = scmp.eq.s32.totalorder %s3061_s14, 0  ;;  %p392_p2 = scmp.lt.s32.totalorder %s2932_s30, 3 }
  0x1f   : > { %s2934_s16 = smov [#allocation13]   ;;  %s2935_s19 = smov [#allocation14]  }
  0x20   : > { %p3066_p3 = pnand %p2047_p0, %p392_p2  ;;  %s404_s17 = sshll.u32 %s2934_s16, 4  ;;  %s3070_s17 = int_to_ptr.vmem [resolvable:$true] %s404_s17 }
  0x21   : > { %s418_s20 = sshll.u32 %s2935_s19, 4  ;;  %s2936_s21 = smov [#allocation17]   ;;  %s3081_s20 = int_to_ptr.vmem [resolvable:$true] %s418_s20 }
  0x22   : > { %s3734_s15 = scalar_select %p3066_p3, 1, 0 }
  0x23   : > { %p2299_p4 = pneg %p3066_p3  ;;  %s3083_s22 = sshll.u32 %s2936_s21, 4  ;;  %s443_s22 = int_to_ptr.vmem [resolvable:$true] %s3083_s22 }
  0x24   : > { %3735 = sst [smem:[#allocation40_spill]] %s3734_s15  ;;  %s3737_s4 = sld [smem:[#allocation48_spill]] }
  0x25   : > { %p3077_p6 = pnand %p2299_p4, %p3700_p1 }
  0x27   : > { %s3736_s18 = scalar_select %p3077_p6, 1, 0 }
  0x28   : > { %p3093_p8 = pneg %p3077_p6 }
  0x2a   : > { %s2446_s16 = scalar_lea.hbm %s3737_s4, 512 }
  0x2b   : > { %p2447_p7 = scmp.ne.s32.totalorder %s3737_s4, %s2446_s16  ;;  %p2453_p11 = scmp.lt.u32.totalorder %s2446_s16, %s3737_s4 }
  0x2c   : > { %s3738_s28 = scalar_select %p3093_p8, 1, 0 }
  0x2d   : > { %p2449_p9 = pnand %p3093_p8, %p2447_p7 }
  0x2f   : > { %p2450_p10 = pneg %p2449_p9 }
  0x31   : > { %p2455_p12 = pnand %p2453_p11, %p2450_p10 }
  0x33   : > { %2458 = shalt.err (!%p2455_p12)
}
  0x34   : > { %s2459_s12 = scalar_lea.vmem %s3070_s17, 512  ;;  %p2467_p4 = scmp.lt.s32.totalorder %s3070_s17, %s3070_s17 }
  0x35   : > { %p2460_p13 = scmp.ne.s32.totalorder %s3070_s17, %s2459_s12  ;;  %p2468_p5 = scmp.lt.s32.totalorder %s2459_s12, %s2459_s12 }
  0x37   : > { %p2462_p0 = pnand %p2460_p13, %p3093_p8  ;;  %p2469_p7 = por %p2468_p5, %p2467_p4 }
  0x39   : > { %p2463_p2 = pneg %p2462_p0 }
  0x3b   : > { %p2470_p9 = pnand %p2469_p7, %p2463_p2 }
  0x3d   : > { %2473 = shalt.err (!%p2470_p9)
}
  0x3e   : > { %s3702_s13 = smov 128   ;;  %s3704_s23 = smov 8  }
  0x3f   : > { %2302 = dma.hbm_to_vmem [thread:$0]  (!%p3077_p6), %s3737_s4, 512, %s3070_s17, [#allocation12], %s3702_s13, %s3702_s13, %s3704_s23  }
  0x40   : > { %s3739_s5 = sld [smem:[#allocation49_spill]] }
  0x46   : > { %s2474_s12 = scalar_lea.hbm %s3739_s5, 16 }
  0x47   : > { %p2475_p5 = scmp.ne.s32.totalorder %s3739_s5, %s2474_s12  ;;  %p2481_p12 = scmp.lt.u32.totalorder %s2474_s12, %s3739_s5 }
  0x49   : > { %p2477_p10 = pnand %p2475_p5, %p3093_p8 }
  0x4b   : > { %p2478_p11 = pneg %p2477_p10 }
  0x4d   : > { %p2483_p13 = pnand %p2481_p12, %p2478_p11 }
  0x4f   : > { %2486 = shalt.err (!%p2483_p13)
}
  0x50   : > { %s2487_s17 = scalar_lea.vmem %s3081_s20, 16  ;;  %s2494_s3 = scalar_lea.vmem %s3081_s20, 32 }
  0x51   : > { %p2488_p0 = scmp.ne.s32.totalorder %s3081_s20, %s2487_s17  ;;  %p2495_p7 = scmp.lt.s32.totalorder %s3081_s20, %s3081_s20 }
  0x52   : > { %p2496_p9 = scmp.lt.s32.totalorder %s2494_s3, %s2487_s17 }
  0x53   : > { %p2490_p2 = pnand %p2488_p0, %p3093_p8 }
  0x54   : > { %p2497_p5 = por %p2496_p9, %p2495_p7 }
  0x55   : > { %p2491_p4 = pneg %p2490_p2 }
  0x57   : > { %p2498_p10 = pnand %p2497_p5, %p2491_p4 }
  0x59   : > { %2501 = shalt.err (!%p2498_p10)
}
  0x5a   : > { %2305 = dma.hbm_to_vmem [thread:$0]  (!%p3077_p6), %s3739_s5, 16, %s3081_s20, [#allocation15]  }
  0x5b   : > { %s3740_s7 = sld [smem:[#allocation51_spill]] }
  0x61   : > { %s2502_s16 = scalar_lea.hbm %s3740_s7, 16 }
  0x62   : > { %p2503_p11 = scmp.ne.s32.totalorder %s3740_s7, %s2502_s16  ;;  %p2509_p0 = scmp.lt.u32.totalorder %s2502_s16, %s3740_s7 }
  0x64   : > { %p2505_p12 = pnand %p2503_p11, %p3093_p8 }
  0x66   : > { %p2506_p13 = pneg %p2505_p12 }
  0x68   : > { %p2511_p2 = pnand %p2509_p0, %p2506_p13 }
  0x6a   : > { %2514 = shalt.err (!%p2511_p2)
}
  0x6b   : > { %s2515_s3 = scalar_lea.vmem %s443_s22, 16  ;;  %s2522_s20 = scalar_lea.vmem %s443_s22, 32 }
  0x6c   : > { %p2516_p4 = scmp.ne.s32.totalorder %s443_s22, %s2515_s3  ;;  %p2523_p5 = scmp.lt.s32.totalorder %s443_s22, %s443_s22 }
  0x6d   : > { %p2524_p10 = scmp.lt.s32.totalorder %s2522_s20, %s2515_s3 }
  0x6e   : > { %p2518_p7 = pnand %p2516_p4, %p3093_p8 }
  0x6f   : > { %p2525_p1 = por %p2524_p10, %p2523_p5 }
  0x70   : > { %p2519_p9 = pneg %p2518_p7 }
  0x72   : > { %p2526_p3 = pnand %p2525_p1, %p2519_p9 }
  0x74   : > { %2529 = shalt.err (!%p2526_p3)
}
  0x75   : > { %2311 = dma.hbm_to_vmem [thread:$0]  (!%p3077_p6), %s3740_s7, 16, %s443_s22, [#allocation18]  }
  0x76   : > { %s2939_s15 = smov [#allocation20]   ;;  %s3741_s9 = sld [smem:[#allocation52_spill]] }
  0x77   : > { %s466_s24 = sshll.u32 %s2939_s15, 4  ;;  %s467_s24 = int_to_ptr.vmem [resolvable:$true] %s466_s24 }
  0x7c   : > { %s2530_s21 = scalar_lea.hbm %s3741_s9, 16 }
  0x7d   : > { %p2531_p11 = scmp.ne.s32.totalorder %s3741_s9, %s2530_s21  ;;  %p2537_p12 = scmp.lt.u32.totalorder %s2530_s21, %s3741_s9 }
  0x7f   : > { %p2533_p1 = pnand %p2531_p11, %p3093_p8 }
  0x81   : > { %p2534_p3 = pneg %p2533_p1 }
  0x83   : > { %p2539_p13 = pnand %p2537_p12, %p2534_p3 }
  0x85   : > { %2542 = shalt.err (!%p2539_p13)
}
  0x86   : > { %s2543_s22 = scalar_lea.vmem %s467_s24, 16  ;;  %s2550_s0 = scalar_lea.vmem %s467_s24, 32 }
  0x87   : > { %p2544_p0 = scmp.ne.s32.totalorder %s467_s24, %s2543_s22  ;;  %p2551_p7 = scmp.lt.s32.totalorder %s467_s24, %s467_s24 }
  0x88   : > { %p2552_p9 = scmp.lt.s32.totalorder %s2550_s0, %s2543_s22 }
  0x89   : > { %p2546_p2 = pnand %p2544_p0, %p3093_p8 }
  0x8a   : > { %p2553_p5 = por %p2552_p9, %p2551_p7 }
  0x8b   : > { %p2547_p4 = pneg %p2546_p2 }
  0x8d   : > { %p2554_p10 = pnand %p2553_p5, %p2547_p4 }
  0x8f   : > { %2557 = shalt.err (!%p2554_p10)
}
  0x90   : > { %2317 = dma.hbm_to_vmem [thread:$0]  (!%p3077_p6), %s3741_s9, 16, %s467_s24, [#allocation21]  }
  0x91   : > { %s2046_s16 = sadd.s32 4294967294, %s2932_s30   ;;  %s55_s19 = sadd.s32 1, %s2928_s29 }
  0x92   : > { %p57_p11 = scmp.ge.s32.totalorder %s55_s19, 2  ;;  %s64_s21 = sadd.s32 1, %s2920_s27 }
  0x93   : > { %p71_p1 = scmp.ne.s32.totalorder %s2920_s27, %s2916_s26  ;;  %p72_p3 = scmp.eq.s32.totalorder %s2932_s30, 0 }
  0x94   : > { %s3795_s19 = smov (%p57_p11, %s55_s19), 0  ;;  %p77_p13 = scmp.ne.s32.totalorder %s2916_s26, %s2912_s25 }
  0x95   : > { %3742 = sst [smem:[#allocation41_spill]] %s3795_s19  ;;  %p3186_p12 = por %p72_p3, %p71_p1 }
  0x96   : > { %s59_s24 = ssub.s32 %s2928_s29, %s3795_s19  ;;  %p351_p0 = scmp.eq.s32.totalorder %s3061_s14, 1 }
  0x97   : > { %p62_p2 = scmp.eq.s32.totalorder %s59_s24, 0  ;;  %p3744_p4 = scmp.eq.s32.totalorder %s3061_s14, 0 }
  0x98   : > { %p3201_p9 = por %p351_p0, %p71_p1  ;;  %p357_p5 = scmp.eq.s32.totalorder %s2046_s16, 1 }
  0x99   : > { %p3197_p7 = por %p3744_p4, %p77_p13  ;;  %p2352_p11 = scmp.lt.s32.totalorder %s2932_s30, 2 }
  0x9a   : > { %s3746_s3 = scalar_select %p3201_p9, 1, 0 }
  0x9b   : > { %s3745_s17 = scalar_select %p3197_p7, 1, 0 }
  0x9c   : > { %s3206_s20 = scalar_select %p62_p2, %s2920_s27, %s64_s21  }
  0x9d   : > { %p3208_p10 = por %p357_p5, %p77_p13  ;;  %s3706_s0 = sand.u32 1, %s2920_s27  }
  0x9e   : > { %3747 = sst [smem:[#allocation42_spill]] %s3206_s20  ;;  %s3215_s2 = sshll.u32 %s2928_s29, 7 }
  0x9f   : > { %s3748_s22 = scalar_select %p3208_p10, 1, 0 }
  0xa0   : > { %s3219_s15 = sshll.u32 %s3706_s0, 3  ;;  %p3223_p1 = pnand %p2352_p11, %p3186_p12 }
  0xa1   : > { %3749 = sst [smem:[#allocation43_spill]] %s3748_s22  ;;  %s3709_s16 = sand.u32 1, %s2932_s30  }
  0xa2   : > { %s3750_s24 = scalar_select %p3223_p1, 1, 0 }
  0xa3   : > { %s3751_s1 = sld [smem:[#allocation45_spill]]  ;;  %s524_s4 = scalar_lea.vmem [#allocation8], %s3219_s15 }
  0xa4   : > { %s531_s0 = sshll.u32 %s524_s4, 4  ;;  %s3239_s12 = scalar_lea.sflag [#allocation9], %s3709_s16  ;;  %s3235_s0 = int_to_ptr.vmem [resolvable:$true] %s531_s0 }
  0xa5   : > { %p3245_p12 = pneg %p3223_p1 }
  0xa7   : > { %s3752_s7 = scalar_select %p3245_p12, 1, 0 }
  0xa9   : > { %s3232_s23 = scalar_lea.hbm %s3751_s1, %s3215_s2  ;;  %s2563_s4 = scalar_lea.hbm %s3751_s1, 256 }
  0xaa   : > { %s2558_s5 = scalar_lea.hbm %s3232_s23, 128  ;;  %p2564_p2 = scmp.lt.u32.totalorder %s3232_s23, %s3751_s1 }
  0xab   : > { %p2559_p3 = scmp.ne.s32.totalorder %s3232_s23, %s2558_s5  ;;  %p2565_p4 = scmp.lt.u32.totalorder %s2563_s4, %s2558_s5 }
  0xac   : > { %p2567_p11 = scmp.lt.u32.totalorder %s2558_s5, %s3232_s23 }
  0xad   : > { %p2561_p13 = pnand %p3245_p12, %p2559_p3  ;;  %p2566_p5 = por %p2565_p4, %p2564_p2 }
  0xaf   : > { %p2562_p0 = pneg %p2561_p13  ;;  %p2568_p10 = por %p2567_p11, %p2566_p5 }
  0xb1   : > { %p2569_p9 = pnand %p2568_p10, %p2562_p0 }
  0xb3   : > { %2572 = shalt.err (!%p2569_p9)
}
  0xb4   : > { %s2573_s16 = scalar_lea.vmem %s3235_s0, 128  ;;  %s2940_s13 = smov [#allocation8]  }
  0xb5   : > { %p2574_p3 = scmp.ne.s32.totalorder %s3235_s0, %s2573_s16  ;;  %s2578_s21 = sshll.u32 %s2940_s13, 4  ;;  %s2579_s21 = int_to_ptr.vmem [resolvable:$false] %s2578_s21 }
  0xb6   : > { %s2580_s9 = scalar_lea.vmem %s2579_s21, 256  ;;  %p2581_p6 = scmp.lt.s32.totalorder %s3235_s0, %s2579_s21 }
  0xb7   : > { %p2576_p13 = pnand %p2574_p3, %p3245_p12  ;;  %p2582_p8 = scmp.lt.s32.totalorder %s2580_s9, %s2573_s16 }
  0xb9   : > { %p2577_p7 = pneg %p2576_p13  ;;  %p2583_p2 = por %p2582_p8, %p2581_p6 }
  0xbb   : > { %p2584_p4 = pnand %p2583_p2, %p2577_p7 }
  0xbd   : > { %2587 = shalt.err (!%p2584_p4)
}
  0xbe   : > { %2330 = dma.hbm_to_vmem [thread:$0]  (!%p3223_p1), %s3232_s23, 128, %s3235_s0, %s3239_s12  }
  0xbf   : > { %s2941_s5 = smov [#allocation16]   ;;  %s2942_s4 = smov [#allocation19]  }
  0xc0   : > { %s428_s19 = sshll.u32 %s2941_s5, 4  ;;  %s452_s1 = sshll.u32 %s2942_s4, 4  ;;  %s429_s19 = int_to_ptr.vmem [resolvable:$true] %s428_s19  ;;  %s3269_s1 = int_to_ptr.vmem [resolvable:$true] %s452_s1 }
  0xc1   : > { %s3753_s6 = sld [smem:[#allocation50_spill]]  ;;  %p3754_p8 = scmp.ne.s32.totalorder %s3738_s28, 0 }
  0xc7   : > { %s2588_s16 = scalar_lea.hbm %s3753_s6, 512 }
  0xc8   : > { %p2589_p6 = scmp.ne.s32.totalorder %s3753_s6, %s2588_s16  ;;  %p2595_p10 = scmp.lt.u32.totalorder %s2588_s16, %s3753_s6 }
  0xca   : > { %p2591_p7 = pnand %p2589_p6, %p3754_p8 }
  0xcc   : > { %p2592_p9 = pneg %p2591_p7 }
  0xce   : > { %p2597_p0 = pnand %p2595_p10, %p2592_p9 }
  0xd0   : > { %2600 = shalt.err (!%p2597_p0)
}
  0xd1   : > { %s2601_s0 = scalar_lea.vmem %s429_s19, 512  ;;  %p2609_p13 = scmp.lt.s32.totalorder %s429_s19, %s429_s19 }
  0xd2   : > { %p2602_p5 = scmp.ne.s32.totalorder %s429_s19, %s2601_s0  ;;  %p2610_p2 = scmp.lt.s32.totalorder %s2601_s0, %s2601_s0 }
  0xd4   : > { %p2604_p11 = pnand %p2602_p5, %p3754_p8  ;;  %p2611_p4 = por %p2610_p2, %p2609_p13 }
  0xd6   : > { %p2605_p3 = pneg %p2604_p11 }
  0xd8   : > { %p2612_p1 = pnand %p2611_p4, %p2605_p3 }
  0xda   : > { %2615 = shalt.err (!%p2612_p1)
}
  0xdb   : > { %p3755_p6 = scmp.ne.s32.totalorder %s3736_s18, 0  ;;  %s3756_s29 = smov 8  }
  0xdc   : > { %s3757_s5 = smov 128   ;;  %s2616_s16 = scalar_lea.hbm %s3687_s8, 512 }
  0xdd   : > { %2308 = dma.hbm_to_vmem [thread:$0]  (!%p3755_p6), %s3753_s6, 512, %s429_s19, [#allocation15], %s3757_s5, %s3757_s5, %s3756_s29  }
  0xde   : > { %p2617_p7 = scmp.ne.s32.totalorder %s3687_s8, %s2616_s16  ;;  %p2623_p10 = scmp.lt.u32.totalorder %s2616_s16, %s3687_s8 }
  0xe0   : > { %p2619_p1 = pnand %p2617_p7, %p3754_p8 }
  0xe2   : > { %p2620_p9 = pneg %p2619_p1 }
  0xe4   : > { %p2625_p0 = pnand %p2623_p10, %p2620_p9 }
  0xe6   : > { %2628 = shalt.err (!%p2625_p0)
}
  0xe7   : > { %s2629_s19 = scalar_lea.vmem %s3269_s1, 512  ;;  %p2637_p13 = scmp.lt.s32.totalorder %s3269_s1, %s3269_s1 }
  0xe8   : > { %p2630_p5 = scmp.ne.s32.totalorder %s3269_s1, %s2629_s19  ;;  %p2638_p2 = scmp.lt.s32.totalorder %s2629_s19, %s2629_s19 }
  0xea   : > { %p2632_p11 = pnand %p2630_p5, %p3754_p8  ;;  %p2639_p4 = por %p2638_p2, %p2637_p13 }
  0xec   : > { %p2633_p3 = pneg %p2632_p11 }
  0xee   : > { %p2640_p7 = pnand %p2639_p4, %p2633_p3 }
  0xf0   : > { %2643 = shalt.err (!%p2640_p7)
}
  0xf1   : > { %2314 = dma.hbm_to_vmem [thread:$0]  (!%p3755_p6), %s3687_s8, 512, %s3269_s1, [#allocation18], %s3757_s5, %s3757_s5, %s3756_s29  }
  0xf2   : > { %s2943_s4 = smov [#allocation22]   ;;  %s2944_s21 = smov [#allocation23]  }
  0xf3   : > { %s476_s13 = sshll.u32 %s2943_s4, 4  ;;  %s490_s16 = sshll.u32 %s2944_s21, 4  ;;  %s477_s13 = int_to_ptr.vmem [resolvable:$true] %s476_s13  ;;  %s3318_s16 = int_to_ptr.vmem [resolvable:$true] %s490_s16 }
  0xf4   : > { %s2644_s0 = scalar_lea.hbm %s3689_s10, 512 }
  0xf5   : > { %p2645_p1 = scmp.ne.s32.totalorder %s3689_s10, %s2644_s0  ;;  %p2651_p0 = scmp.lt.u32.totalorder %s2644_s0, %s3689_s10 }
  0xf7   : > { %p2647_p9 = pnand %p2645_p1, %p3754_p8 }
  0xf9   : > { %p2648_p10 = pneg %p2647_p9 }
  0xfb   : > { %p2653_p5 = pnand %p2651_p0, %p2648_p10 }
  0xfd   : > { %2656 = shalt.err (!%p2653_p5)
}
  0xfe   : > { %s2657_s20 = scalar_lea.vmem %s477_s13, 512  ;;  %p2665_p2 = scmp.lt.s32.totalorder %s477_s13, %s477_s13 }
  0xff   : > { %p2658_p11 = scmp.ne.s32.totalorder %s477_s13, %s2657_s20  ;;  %p2666_p4 = scmp.lt.s32.totalorder %s2657_s20, %s2657_s20 }
 0x101   : > { %p2660_p3 = pnand %p2658_p11, %p3754_p8  ;;  %p2667_p7 = por %p2666_p4, %p2665_p2 }
 0x103   : > { %p2661_p13 = pneg %p2660_p3 }
 0x105   : > { %p2668_p12 = pnand %p2667_p7, %p2661_p13 }
 0x107   : > { %2671 = shalt.err (!%p2668_p12)
}
 0x108   : > { %2320 = dma.hbm_to_vmem [thread:$0]  (!%p3755_p6), %s3689_s10, 512, %s477_s13, [#allocation21], %s3757_s5, %s3757_s5, %s3756_s29  }
 0x109   : > { %s2672_s23 = scalar_lea.hbm %s3690_s11, 16 }
 0x10a   : > { %p2673_p1 = scmp.ne.s32.totalorder %s3690_s11, %s2672_s23  ;;  %p2679_p10 = scmp.lt.u32.totalorder %s2672_s23, %s3690_s11 }
 0x10c   : > { %p2675_p12 = pnand %p2673_p1, %p3754_p8 }
 0x10e   : > { %p2676_p9 = pneg %p2675_p12 }
 0x110   : > { %p2681_p0 = pnand %p2679_p10, %p2676_p9 }
 0x112   : > { %2684 = shalt.err (!%p2681_p0)
}
 0x113   : > { %s2685_s29 = scalar_lea.vmem %s3318_s16, 16  ;;  %s2692_s5 = scalar_lea.vmem %s3318_s16, 32 }
 0x114   : > { %p2686_p5 = scmp.ne.s32.totalorder %s3318_s16, %s2685_s29  ;;  %p2693_p13 = scmp.lt.s32.totalorder %s3318_s16, %s3318_s16 }
 0x115   : > { %p2694_p2 = scmp.lt.s32.totalorder %s2692_s5, %s2685_s29 }
 0x116   : > { %p2688_p11 = pnand %p2686_p5, %p3754_p8 }
 0x117   : > { %p2695_p4 = por %p2694_p2, %p2693_p13 }
 0x118   : > { %p2689_p3 = pneg %p2688_p11 }
 0x11a   : > { %p2696_p7 = pnand %p2695_p4, %p2689_p3 }
 0x11c   : > { %2699 = shalt.err (!%p2696_p7)
}
 0x11d   : > { %2323 = dma.hbm_to_vmem [thread:$0]  (!%p3755_p6), %s3690_s11, 16, %s3318_s16, [#allocation24]  }
 0x11e   : > { %s3758_s4 = sld [smem:[#allocation44_spill]]  ;;  %s505_s9 = scalar_lea.vmem [#allocation5], %s3219_s15 }
 0x11f   : > { %s513_s18 = sshll.u32 %s505_s9, 4  ;;  %s3759_s23 = sand.u32 1, %s2920_s27   ;;  %s514_s18 = int_to_ptr.vmem [resolvable:$true] %s513_s18 }
 0x120   : > { %s502_s0 = scalar_lea.sflag [#allocation6], %s3759_s23  ;;  %p3760_p1 = scmp.ne.s32.totalorder %s3752_s7, 0 }
 0x124   : > { %s3369_s21 = scalar_lea.hbm %s3758_s4, %s3215_s2  ;;  %s2705_s1 = scalar_lea.hbm %s3758_s4, 256 }
 0x125   : > { %s2700_s19 = scalar_lea.hbm %s3369_s21, 128  ;;  %p2706_p6 = scmp.lt.u32.totalorder %s3369_s21, %s3758_s4 }
 0x126   : > { %p2701_p8 = scmp.ne.s32.totalorder %s3369_s21, %s2700_s19  ;;  %p2707_p10 = scmp.lt.u32.totalorder %s2705_s1, %s2700_s19 }
 0x127   : > { %p2709_p5 = scmp.lt.u32.totalorder %s2700_s19, %s3369_s21 }
 0x128   : > { %p2703_p12 = pnand %p2701_p8, %p3760_p1  ;;  %p2708_p0 = por %p2707_p10, %p2706_p6 }
 0x12a   : > { %p2704_p9 = pneg %p2703_p12  ;;  %p2710_p11 = por %p2709_p5, %p2708_p0 }
 0x12c   : > { %p2711_p3 = pnand %p2710_p11, %p2704_p9 }
 0x12e   : > { %2714 = shalt.err (!%p2711_p3)
}
 0x12f   : > { %s2715_s13 = scalar_lea.vmem %s514_s18, 128  ;;  %s2945_s20 = smov [#allocation5]  }
 0x130   : > { %p2716_p13 = scmp.ne.s32.totalorder %s514_s18, %s2715_s13  ;;  %s2720_s28 = sshll.u32 %s2945_s20, 4  ;;  %s2721_s28 = int_to_ptr.vmem [resolvable:$false] %s2720_s28 }
 0x131   : > { %s2722_s6 = scalar_lea.vmem %s2721_s28, 256  ;;  %p2723_p7 = scmp.lt.s32.totalorder %s514_s18, %s2721_s28 }
 0x132   : > { %p2718_p2 = pnand %p2716_p13, %p3760_p1  ;;  %p2724_p8 = scmp.lt.s32.totalorder %s2722_s6, %s2715_s13 }
 0x134   : > { %p2719_p4 = pneg %p2718_p2  ;;  %p2725_p12 = por %p2724_p8, %p2723_p7 }
 0x136   : > { %p2726_p6 = pnand %p2725_p12, %p2719_p4 }
 0x138   : > { %2729 = shalt.err (!%p2726_p6)
}
 0x139   : > { %p3761_p10 = scmp.ne.s32.totalorder %s3750_s24, 0  ;;  %s3762_s19 = sld [smem:[#allocation46_spill]] }
 0x13a   : > { %s542_s22 = scalar_lea.vmem [#allocation10], %s3219_s15 }
 0x13b   : > { %2327 = dma.hbm_to_vmem [thread:$0]  (!%p3761_p10), %s3369_s21, 128, %s514_s18, %s502_s0  }
 0x13c   : > { %s549_s1 = sshll.u32 %s542_s22, 4  ;;  %s550_s1 = int_to_ptr.vmem [resolvable:$true] %s549_s1 }
 0x13f   : > { %s3395_s16 = scalar_lea.hbm %s3762_s19, %s3215_s2  ;;  %s2735_s21 = scalar_lea.hbm %s3762_s19, 256 }
 0x140   : > { %s2730_s29 = scalar_lea.hbm %s3395_s16, 128  ;;  %p2736_p11 = scmp.lt.u32.totalorder %s3395_s16, %s3762_s19 }
 0x141   : > { %p2731_p9 = scmp.ne.s32.totalorder %s3395_s16, %s2730_s29  ;;  %p2737_p3 = scmp.lt.u32.totalorder %s2735_s21, %s2730_s29 }
 0x142   : > { %p2739_p2 = scmp.lt.u32.totalorder %s2730_s29, %s3395_s16 }
 0x143   : > { %p2733_p0 = pnand %p2731_p9, %p3760_p1  ;;  %p2738_p13 = por %p2737_p3, %p2736_p11 }
 0x145   : > { %p2734_p5 = pneg %p2733_p0  ;;  %p2740_p4 = por %p2739_p2, %p2738_p13 }
 0x147   : > { %p2741_p7 = pnand %p2740_p4, %p2734_p5 }
 0x149   : > { %2744 = shalt.err (!%p2741_p7)
}
 0x14a   : > { %s2745_s20 = scalar_lea.vmem %s550_s1, 128  ;;  %s2946_s28 = smov [#allocation10]  }
 0x14b   : > { %p2746_p8 = scmp.ne.s32.totalorder %s550_s1, %s2745_s20  ;;  %s2750_s6 = sshll.u32 %s2946_s28, 4  ;;  %s2751_s6 = int_to_ptr.vmem [resolvable:$false] %s2750_s6 }
 0x14c   : > { %s2752_s9 = scalar_lea.vmem %s2751_s6, 256  ;;  %p2753_p9 = scmp.lt.s32.totalorder %s550_s1, %s2751_s6 }
 0x14d   : > { %p2748_p12 = pnand %p2746_p8, %p3760_p1  ;;  %p2754_p0 = scmp.lt.s32.totalorder %s2752_s9, %s2745_s20 }
 0x14f   : > { %p2749_p6 = pneg %p2748_p12  ;;  %p2755_p10 = por %p2754_p0, %p2753_p9 }
 0x151   : > { %p2756_p3 = pnand %p2755_p10, %p2749_p6 }
 0x153   : > { %2759 = shalt.err (!%p2756_p3)
}
 0x154   : > { %p3763_p11 = scmp.ne.s32.totalorder %s3750_s24, 0  ;;  %s3764_s29 = sld [smem:[#allocation47_spill]] }
 0x155   : > { %s560_s21 = scalar_lea.vmem [#allocation11], %s3219_s15  ;;  %s3766_s0 = sand.u32 1, %s2932_s30  }
 0x156   : > { %2333 = dma.hbm_to_vmem [thread:$0]  (!%p3763_p11), %s3395_s16, 128, %s550_s1, %s3239_s12  }
 0x157   : > { %s568_s18 = sshll.u32 %s560_s21, 4  ;;  %s557_s20 = scalar_lea.sflag [#allocation12], %s3766_s0  ;;  %s569_s18 = int_to_ptr.vmem [resolvable:$true] %s568_s18 }
 0x15a   : > { %s3765_s5 = smov %s3764_s29  ;;  %s3420_s13 = scalar_lea.hbm %s3764_s29, %s3215_s2 }
 0x15b   : > { %s2760_s28 = scalar_lea.hbm %s3420_s13, 128  ;;  %s2765_s1 = scalar_lea.hbm %s3765_s5, 256 }
 0x15c   : > { %p2761_p10 = scmp.ne.s32.totalorder %s3420_s13, %s2760_s28  ;;  %p2766_p2 = scmp.lt.u32.totalorder %s3420_s13, %s3765_s5 }
 0x15d   : > { %p2767_p4 = scmp.lt.u32.totalorder %s2765_s1, %s2760_s28  ;;  %p2769_p8 = scmp.lt.u32.totalorder %s2760_s28, %s3420_s13 }
 0x15e   : > { %p2763_p5 = pnand %p2761_p10, %p3760_p1 }
 0x15f   : > { %p2768_p7 = por %p2767_p4, %p2766_p2 }
 0x160   : > { %p2764_p13 = pneg %p2763_p5 }
 0x161   : > { %p2770_p12 = por %p2769_p8, %p2768_p7 }
 0x163   : > { %p2771_p6 = pnand %p2770_p12, %p2764_p13 }
 0x165   : > { %2774 = shalt.err (!%p2771_p6)
}
 0x166   : > { %s2775_s15 = scalar_lea.vmem %s569_s18, 128  ;;  %s2947_s9 = smov [#allocation11]  }
 0x167   : > { %p2776_p9 = scmp.ne.s32.totalorder %s569_s18, %s2775_s15  ;;  %s2780_s23 = sshll.u32 %s2947_s9, 4  ;;  %s2781_s23 = int_to_ptr.vmem [resolvable:$false] %s2780_s23 }
 0x168   : > { %s2782_s22 = scalar_lea.vmem %s2781_s23, 256  ;;  %p2783_p10 = scmp.lt.s32.totalorder %s569_s18, %s2781_s23 }
 0x169   : > { %p2778_p0 = pnand %p2776_p9, %p3760_p1  ;;  %p2784_p5 = scmp.lt.s32.totalorder %s2782_s22, %s2775_s15 }
 0x16b   : > { %p2779_p3 = pneg %p2778_p0  ;;  %p2785_p11 = por %p2784_p5, %p2783_p10 }
 0x16d   : > { %p2786_p2 = pnand %p2785_p11, %p2779_p3 }
 0x16f   : > { %2789 = shalt.err (!%p2786_p2)
}
 0x170   : > { %p3767_p4 = scmp.ne.s32.totalorder %s3750_s24, 0  ;;  %s3768_s29 = sld [smem:[#allocation40_spill]] }
 0x172   : > { %2336 = dma.hbm_to_vmem [thread:$0]  (!%p3767_p4), %s3420_s13, 128, %s569_s18, %s557_s20  }
 0x176   : > { %p3769_p13 = scmp.ne.s32.totalorder %s3768_s29, 0 }
 0x177   : > { %s3445_s7 = sand.u32 (!%p3769_p13), 1, %s2916_s26   ;;  %p3770_p1 = scmp.ne.s32.totalorder (!%p3769_p13), %s3745_s17, 0 }
 0x178   : > { %577 = sbr.rel (%p3769_p13) target bundleno = 2329 (0x919), region = 68  ;;  %s3448_s21 = sshll.u32 (!%p3769_p13), %s3445_s7, 3 }
 0x179   : > { %s580_s0 = scalar_lea.sflag (!%p3769_p13), [#allocation6], %s3445_s7  ;;  %s583_s28 = scalar_lea.vmem (!%p3769_p13), [#allocation5], %s3448_s21 }
 0x17f   : > { %2871 = dma.done.wait (%p3770_p1), %s580_s0, 128  }
 0x180   : > { %2873 = vsyncadd (%p3770_p1), %s580_s0, 4294967168  ;;  %s588_s24 = sand.u32 1, %s3061_s14   ;;  %s592_s18 = scalar_lea.vmem [#allocation8], %s3448_s21 }
 0x181   : > { %s589_s13 = scalar_lea.sflag [#allocation9], %s588_s24 }
 0x182   : > { %2875 = dma.done.wait (%p3770_p1), %s589_s13, 256  }
 0x183   : > { %2877 = vsyncadd (%p3770_p1), %s589_s13, 4294967040  ;;  %s601_s20 = scalar_lea.vmem [#allocation10], %s3448_s21  ;;  %s607_s12 = scalar_lea.sflag [#allocation12], %s588_s24 }
 0x184   : > { %s610_s16 = scalar_lea.vmem [#allocation11], %s3448_s21 }
 0x185   : > { %2879 = dma.done.wait (%p3770_p1), %s607_s12, 128  }
 0x186   : > { %2881 = vsyncadd (%p3770_p1), %s607_s12, 4294967168  ;;  %p3771_p11 = scmp.eq.s32.totalorder %s3061_s14, 0 }
 0x188   : > { %2883 = dma.done.wait (%p3771_p11), [#allocation12], 512   ;;  %p3772_p7 = pmov %p3771_p11 }
 0x18a   : > { %2885 = vsyncadd (%p3772_p7), [#allocation12], 4294966784  ;;  %p3773_p8 = pmov %p3772_p7 }
 0x18b   : > { %p3774_p12 = pmov %p3772_p7 }
 0x18c   : > { %2887 = dma.done.wait (%p3773_p8), [#allocation15], 528  }
 0x18d   : > { %2889 = vsyncadd (%p3774_p12), [#allocation15], 4294966768  ;;  %p3775_p6 = pmov %p3772_p7 }
 0x18f   : > { %2891 = dma.done.wait (%p3775_p6), [#allocation18], 528   ;;  %p3776_p9 = pmov %p3775_p6 }
 0x190   : > { %p3777_p0 = pmov %p3775_p6 }
 0x191   : > { %2893 = vsyncadd (%p3776_p9), [#allocation18], 4294966768 }
 0x192   : > { %2895 = dma.done.wait (%p3777_p0), [#allocation21], 528   ;;  %p3778_p3 = pmov %p3777_p0 }
 0x193   : > { %p3779_p10 = pmov %p3777_p0 }
 0x194   : > { %2897 = vsyncadd (%p3778_p3), [#allocation21], 4294966768 }
 0x195   : > { %2899 = dma.done.wait (%p3779_p10), [#allocation24], 16   ;;  %p3780_p5 = pmov %p3777_p0 }
 0x196   : > { %v2948_v0 = vmov 0.0|0.0   ;;  %vm2949_vm0 = vmmov 0   ;;  %v2950_v1 = vmov 0.0   ;;  %v711_v2 = vld [vmem:[#allocation16] sm:$0xff]  ;;  %v712_v3 = vld [vmem:[#allocation16 + $0x8] sm:$0xff]  ;;  %v713_v4 = vld [vmem:[#allocation16 + $0x10] sm:$0xff] }
 0x197   : > { %2901 = vsyncadd (%p3780_p5), [#allocation24], 4294967280  ;;  %2231 = vmatprep.subr.bf16.mxu0 %v2948_v0  ;;  %2155 = vmatprep.mubr.msk.f32.mxu0 %vm2949_vm0, %v2950_v1  ;;  %v2232_v5 = vpack.c.bf16 %v712_v3, %v711_v2  ;;  %v714_v6 = vld [vmem:[#allocation16 + $0x18] sm:$0xff]  ;;  %v797_v8 = vld [vmem:[#allocation19] sm:$0xff]  ;;  %vm722_vm1 = vcmask 261120   ;;  %vm971_vm2 = vcmask 64512  }
 0x198   : > { %2237 = vmatprep.subr.bf16.mxu1 %v2948_v0  ;;  %2166 = vmatprep.mubr.msk.f32.mxu1 %vm2949_vm0, %v2950_v1  ;;  %v2235_v7 = vpack.c.bf16 %v714_v6, %v713_v4  ;;  %v798_v9 = vld [vmem:[#allocation19 + $0x8] sm:$0xff]  ;;  %v883_v10 = vld [vmem:[#allocation13] sm:$0xff]  ;;  %v886_v16 = vld [vmem:[#allocation13 + $0x18] sm:$0xff]  ;;  %s2951_s14 = smov 120   ;;  %s2952_s17 = smov 112   ;;  %vm1309_vm3 = vcmask 130112  }
 0x199   : > { %2233 = vmatpush3.bf16.msra.mxu0 %v2232_v5  ;;  %v884_v11 = vld [vmem:[#allocation13 + $0x8] sm:$0xff]  ;;  %v2238_v12 = vpack.c.bf16 %v798_v9, %v797_v8  ;;  %v709_v13 = vld [vmem:[%s592_s18] sm:$0xff]  ;;  %v2080_v23 = vld [vmem:[#allocation17] ss:$0 sm:$0xff]  ;;  %s2953_s1 = smov 104   ;;  %s2079_s2 = sshll.u32 %s3445_s7, 5 }
 0x19a   : > { %2234 = vmatprep.subr.bf16.mxu0 %v2948_v0  ;;  %v2244_v14 = vpack.c.bf16 %v884_v11, %v883_v10  ;;  %v885_v15 = vld [vmem:[#allocation13 + $0x10] sm:$0xff]  ;;  %v882_v18 = vld [vmem:[%s583_s28] sm:$0xff]  ;;  %s3547_s6 = scalar_lea.vmem [#allocation26], %s2079_s2  ;;  %s2954_s15 = smov 8   ;;  %vm1486_vm4 = vcmask 195712   ;;  %vm1663_vm5 = vcmask 261312  }
 0x19b   : > { %2239 = vmatpush3.bf16.msra.mxu1 %v2238_v12  ;;  %v2247_v17 = vpack.c.bf16 %v886_v16, %v885_v15  ;;  %v799_v19 = vld [vmem:[#allocation19 + $0x10] sm:$0xff]  ;;  %v800_v20 = vld [vmem:[#allocation19 + $0x18] sm:$0xff]  ;;  %v2082_v32 = vld [vmem:[#allocation20] ss:$0 sm:$0xff]  ;;  %s2955_s9 = smov 16   ;;  %s3781_s23 = sld [smem:[#allocation38_spill]] }
 0x19c   : > { %2240 = vmatprep.subr.bf16.mxu1 %v2948_v0  ;;  %v2241_v21 = vpack.c.bf16 %v800_v20, %v799_v19  ;;  %v710_v22 = vld [vmem:[%s601_s20] sm:$0xff]  ;;  %v968_v37 = vld [vmem:[%s610_s16] sm:$0xff]  ;;  %s2956_s22 = smov 24   ;;  %s1785_s0 = sshll.u32 %s3547_s6, 4  ;;  %s3597_s0 = int_to_ptr.vmem [resolvable:$true] %s1785_s0 }
 0x19d   : > { %2236 = vmatpush3.bf16.msra.mxu0 %v2235_v7  ;;  %v2084_v27 = vld [vmem:[#allocation14] ss:$0 sm:$0xff]  ;;  %s3782_s13 = sld [smem:[#allocation54_spill]]  ;;  %s1757_s20 = scalar_lea.sflag [#allocation27], %s3445_s7 }
 0x19e   : > { %2243 = vmatprep.subr.bf16.mxu0 %v2948_v0  ;;  %s2790_s12 = scalar_lea.vmem %s3597_s0, 512  ;;  %p3783_p4 = scmp.ne.s32.totalorder %s3746_s3, 0 }
 0x19f   : > { %2242 = vmatpush3.bf16.msra.mxu1 %v2241_v21  ;;  %p2791_p2 = scmp.ne.s32.totalorder %s3597_s0, %s2790_s12  ;;  %s2957_s16 = smov [#allocation26]  }
 0x1a0   : > { %2156 = vmatmul.mubr.msk.f32.vlgmr.msra.gmra.mrb[0].mxu0 %vm722_vm1, %v709_v13  ;;  %2180 = vmatprep.subr.mxu1 %v2950_v1 }
 0x1a1   : > { %2245 = vmatpush3.bf16.msra.mxu0 %v2244_v14  ;;  %2177 = vmatprep.mubr.msk.f32.mxu0 %vm2949_vm0, %v2950_v1  ;;  %s2110_s29 = sshll.u32 %s3781_s23, 9  ;;  %p2792_p13 = pnand %p2791_p2, %p3783_p4 }
 0x1a2   : > { %2246 = vmatprep.subr.bf16.mxu0 %v2948_v0  ;;  %2167 = vmatmul.mubr.msk.f32.vlgmr.msra.gmra.mrb[0].mxu1 %vm722_vm1, %v710_v22 }
 0x1a3   : > { %2182 = vmatprep.mubr.msk.f32.mxu1 %vm2949_vm0, %v2950_v1  ;;  %s3595_s18 = scalar_lea.hbm %s3782_s13, %s2110_s29  ;;  %p2793_p1 = pneg %p2792_p13 }
 0x1a5   : > { %2248 = vmatpush3.bf16.msra.mxu0 %v2247_v17 }
 0x1a6   : > { %2200 = vmatprep.subr.mxu0 %v2950_v1 }
 0x1a8   : > { %2178 = vmatmul.mubr.msk.f32.vlgmr.msra.gmra.mrb[2].mxu0 %vm722_vm1, %v882_v18 }
 0x1a9   : > { %2202 = vmatprep.mubr.msk.f32.mxu0 %vm2949_vm0, %v2950_v1 }
 0x273   : > { %v792_v24 = vpop.f32.mrb[0].mxu0 }
 0x274   : > { %v793_v25 = vadd.f32 %v2080_v23, %v792_v24  ;;  %v2157_v26 = vpop.f32.mrb[1].mxu0 }
 0x275   : > { %v877_v33 = vpop.f32.mrb[0].mxu1 }
 0x276   : > { %796 = vst.msk [vmem:[#allocation2] sm:$0xff] %vm722_vm1, %v793_v25  ;;  %v878_v34 = vadd.f32 %v2082_v32, %v877_v33  ;;  %v2168_v35 = vpop.f32.mrb[1].mxu1 }
 0x277   : > { %v1666_v35 = vld [vmem:[#allocation22] sm:$0xff] }
 0x278   : > { %881 = vst.msk [vmem:[#allocation3] sm:$0xff] %vm722_vm1, %v878_v34 }
 0x27b   : > { %v964_v28 = vpop.f32.mrb[2].mxu0 }
 0x27c   : > { %v2179_v29 = vpop.f32.mrb[3].mxu0  ;;  %v965_v31 = vadd.f32 %v2084_v27, %v964_v28 }
 0x27d   : > { %v1134_v30 = vld [vmem:[#allocation2] sm:$0xff] }
 0x27e   : > { %1139 = vrot.lane.b32.xlu1 %v1134_v30, %s2951_s14  ;;  %2181 = vmatpush3.xpose.msk.msra.mxu1 %vm971_vm2, %v1134_v30 }
 0x27f   : > { %2185 = vmatprep.subr.mxu1 %v2950_v1  ;;  %v3527_v36 = vld [vmem:[#allocation3] sm:$0xff] }
 0x281   : > { %2183 = vmatmul.mubr.msk.f32.vlgmr.msra.gmra.mrb[2].mxu1 %vm971_vm2, %v965_v31 }
 0x282   : > { %1136 = vrot.lane.b32.xlu1 %v965_v31, %s2951_s14  ;;  %2187 = vmatprep.mubr.msk.f32.mxu1 %vm2949_vm0, %v2950_v1 }
 0x283   : > { %2186 = vmatpush3.msra.mxu1 %v3527_v36 }
 0x284   : > { %2190 = vmatprep.subr.mxu1 %v2950_v1 }
 0x286   : > { %1313 = vrot.lane.b32.xlu1 %v965_v31, %s2952_s17 }
 0x28a   : > { %1493 = vrot.lane.b32.xlu1 %v1134_v30, %s2953_s1 }
 0x28e   : > { %1490 = vrot.lane.b32.xlu1 %v965_v31, %s2953_s1 }
 0x2f0   : > { %v1140_v47 = vpop.permute.xlu1 %1139 }
 0x2f4   : > { %v1137_v48 = vpop.permute.xlu1 %1136 }
 0x2f8   : > { %v1314_v49 = vpop.permute.xlu1 %1313 }
 0x2fc   : > { %v1494_v52 = vpop.permute.xlu1 %1493 }
 0x300   : > { %v1491_v54 = vpop.permute.xlu1 %1490 }
 0x354   : > { %v1044_v38 = vpop.f32.mrb[2].mxu1 }
 0x355   : > { %v1045_v39 = vadd.f32 %v1044_v38, %v968_v37  ;;  %v2184_v40 = vpop.f32.mrb[3].mxu1  ;;  %v1668_v38 = vld [vmem:[#allocation22 + $0x10] sm:$0xff] }
 0x357   : > { %v1048_v41 = vsel %vm971_vm2, %v1045_v39, -inf }
 0x358   : > { %1049 = vmax.xlane.f32.xlu0 %v1048_v41 }
 0x3e5   : > { %v1050_v42 = vpop.xlane.xlu0 %1049 }
 0x3e6   : > { %v1051_v43 = vsub.f32 %v1045_v39, %v1050_v42  ;;  %v1669_v39 = vld [vmem:[#allocation22 + $0x18] sm:$0xff] }
 0x3e7   : > { %v2253_v40 = vpack.c.bf16 %v1669_v39, %v1668_v38 }
 0x3e8   : > { %v1052_v44 = vmul.f32 1.442695, %v1051_v43 }
 0x3ea   : > { %2430 = vpow2.f32 %v1052_v44 }
 0x3f4   : > { %v2431_v45 = vpop.eup %2430 }
 0x3f5   : > { %v1054_v46 = vsel %vm971_vm2, %v2431_v45, 0.0 }
 0x3f6   : > { %1055 = vadd.xlane.f32.xlu0 %v1054_v46 }
 0x40c   : > { %1316 = vrot.lane.b32.xlu0 %v1134_v30, %s2952_s17 }
 0x483   : > { %v1056_v50 = vpop.xlane.xlu0 %1055 }
 0x484   : > { %2432 = vrcp.f32 %v1056_v50 }
 0x487   : > { %v1317_v51 = vpop.permute.xlu0 %1316 }
 0x488   : > { %2201 = vmatpush3.xpose.msk.msra.mxu0 %vm971_vm2, %v1317_v51 }
 0x489   : > { %2210 = vmatprep.subr.mxu0 %v2950_v1 }
 0x48b   : > { %2203 = vmatmul.mubr.msk.f32.vlgmr.msra.gmra.mrb[4].mxu0 %vm971_vm2, %v1314_v49 }
 0x48c   : > { %2211 = vmatpush3.xpose.msk.msra.mxu0 %vm971_vm2, %v1494_v52  ;;  %2212 = vmatprep.mubr.msk.f32.mxu0 %vm2949_vm0, %v2950_v1 }
 0x48d   : > { %2249 = vmatprep.subr.bf16.mxu0 %v2948_v0 }
 0x48e   : > { %v2433_v53 = vpop.eup %2432 }
 0x48f   : > { %v1058_v55 = vmul.f32 %v2433_v53, %v2431_v45  ;;  %2213 = vmatmul.mubr.msk.f32.vlgmr.msra.gmra.mrb[6].mxu0 %vm971_vm2, %v1491_v54 }
 0x490   : > { %2228 = vmatprep.mubr.msk.f32.mxu0 %vm2949_vm0, %v2950_v1 }
 0x491   : > { %1059 = vst.msk [vmem:[%s3547_s6] sm:$0xff] %vm971_vm2, %v1058_v55  ;;  %2188 = vmatmul.mubr.msk.f32.vlgmr.msra.gmra.mrb[4].mxu1 %vm971_vm2, %v1058_v55 }
 0x492   : > { %2191 = vmatpush3.xpose.msk.msra.mxu1 %vm971_vm2, %v1140_v47  ;;  %2192 = vmatprep.mubr.msk.f32.mxu1 %vm2949_vm0, %v2950_v1 }
 0x493   : > { %2195 = vmatprep.subr.mxu1 %v2950_v1 }
 0x495   : > { %2193 = vmatmul.mubr.msk.f32.vlgmr.msra.gmra.mrb[6].mxu1 %vm971_vm2, %v1137_v48 }
 0x496   : > { %2197 = vmatprep.mubr.msk.f32.mxu1 %vm2949_vm0, %v2950_v1 }
 0x55e   : > { %v1388_v56 = vpop.f32.mrb[4].mxu0 }
 0x55f   : > { %v1389_v57 = vadd.f32 %v1388_v56, %v968_v37  ;;  %v2204_v58 = vpop.f32.mrb[5].mxu0 }
 0x561   : > { %v1392_v59 = vsel %vm971_vm2, %v1389_v57, -inf }
 0x562   : > { %1393 = vmax.xlane.f32.xlu0 %v1392_v59  ;;  %v1565_v60 = vpop.f32.mrb[6].mxu0 }
 0x563   : > { %v2214_v61 = vpop.f32.mrb[7].mxu0  ;;  %v1566_v5 = vadd.f32 %v1565_v60, %v968_v37 }
 0x564   : > { %v1129_v62 = vpop.f32.mrb[4].mxu1 }
 0x565   : > { %1133 = vst.msk [vmem:[#allocation4] sm:$0xff] %vm971_vm2, %v1129_v62  ;;  %v2189_v63 = vpop.f32.mrb[5].mxu1  ;;  %v1569_v7 = vsel %vm971_vm2, %v1566_v5, -inf }
 0x568   : > { %v1211_v2 = vpop.f32.mrb[6].mxu1 }
 0x569   : > { %v1212_v3 = vadd.f32 %v1211_v2, %v968_v37  ;;  %v2194_v4 = vpop.f32.mrb[7].mxu1 }
 0x56b   : > { %v1215_v6 = vsel %vm971_vm2, %v1212_v3, -inf }
 0x56c   : > { %1216 = vmax.xlane.f32.xlu1 %v1215_v6 }
 0x570   : > { %1570 = vmax.xlane.f32.xlu1 %v1569_v7 }
 0x5ef   : > { %v1394_v8 = vpop.xlane.xlu0 %1393 }
 0x5f0   : > { %v1395_v9 = vsub.f32 %v1389_v57, %v1394_v8 }
 0x5f2   : > { %v1396_v10 = vmul.f32 1.442695, %v1395_v9 }
 0x5f4   : > { %2434 = vpow2.f32 %v1396_v10 }
 0x5f9   : > { %v1217_v11 = vpop.xlane.xlu1 %1216 }
 0x5fa   : > { %v1218_v19 = vsub.f32 %v1212_v3, %v1217_v11 }
 0x5fc   : > { %v1219_v20 = vmul.f32 1.442695, %v1218_v19 }
 0x5fd   : > { %v1571_v12 = vpop.xlane.xlu1 %1570 }
 0x5fe   : > { %v2435_v13 = vpop.eup %2434  ;;  %v1572_v14 = vsub.f32 %v1566_v5, %v1571_v12 }
 0x5ff   : > { %v1398_v15 = vsel %vm971_vm2, %v2435_v13, 0.0 }
 0x600   : > { %v1573_v16 = vmul.f32 1.442695, %v1572_v14  ;;  %1399 = vadd.xlane.f32.xlu0 %v1398_v15 }
 0x602   : > { %2436 = vpow2.f32 %v1573_v16 }
 0x603   : > { %2438 = vpow2.f32 %v1219_v20 }
 0x60c   : > { %v2437_v17 = vpop.eup %2436 }
 0x60d   : > { %v1575_v18 = vsel %vm971_vm2, %v2437_v17, 0.0  ;;  %v2439_v21 = vpop.eup %2438 }
 0x60e   : > { %1576 = vadd.xlane.f32.xlu1 %v1575_v18  ;;  %v1221_v22 = vsel %vm971_vm2, %v2439_v21, 0.0 }
 0x616   : > { %1229 = vrot.lane.b32.xlu0 %v3527_v36, %s2951_s14  ;;  %s2794_s14 = sshll.u32 %s2957_s16, 4  ;;  %s2795_s14 = int_to_ptr.vmem [resolvable:$false] %s2794_s14 }
 0x617   : > { %p2797_p11 = scmp.lt.s32.totalorder %s3597_s0, %s2795_s14 }
 0x61f   : > { %1406 = vrot.lane.b32.xlu1 %v3527_v36, %s2952_s17  ;;  %s2796_s17 = scalar_lea.vmem %s2795_s14, 1024 }
 0x620   : > { %p2798_p7 = scmp.lt.s32.totalorder %s2796_s17, %s2790_s12 }
 0x622   : > { %p2799_p8 = por %p2798_p7, %p2797_p11 }
 0x624   : > { %p2800_p12 = pnand %p2799_p8, %p2793_p1 }
 0x643   : > { %1222 = vadd.xlane.f32.xlu1 %v1221_v22 }
 0x654   : > { %1583 = vrot.lane.b32.xlu1 %v3527_v36, %s2953_s1  ;;  %v1667_v36 = vld [vmem:[#allocation22 + $0x8] sm:$0xff] }
 0x655   : > { %v2250_v37 = vpack.c.bf16 %v1667_v36, %v1666_v35 }
 0x657   : > { %2251 = vmatpush3.bf16.msra.mxu0 %v2250_v37 }
 0x658   : > { %2252 = vmatprep.subr.bf16.mxu0 %v2948_v0 }
 0x65b   : > { %2254 = vmatpush3.bf16.msra.mxu0 %v2253_v40 }
 0x68d   : > { %v1400_v23 = vpop.xlane.xlu0 %1399 }
 0x68e   : > { %2440 = vrcp.f32 %v1400_v23 }
 0x691   : > { %v1230_v24 = vpop.permute.xlu0 %1229 }
 0x692   : > { %2196 = vmatpush3.msra.mxu1 %v1230_v24 }
 0x693   : > { %2205 = vmatprep.subr.mxu1 %v2950_v1 }
 0x698   : > { %v2441_v25 = vpop.eup %2440 }
 0x699   : > { %v1402_v26 = vmul.f32 %v2441_v25, %v2435_v13 }
 0x69b   : > { %2095 = vst.msk [vmem:[%s3547_s6 + $0x10] sm:$0xff] %vm971_vm2, %v1402_v26  ;;  %v1577_v27 = vpop.xlane.xlu1 %1576 }
 0x69c   : > { %2442 = vrcp.f32 %v1577_v27 }
 0x69f   : > { %v1407_v30 = vpop.permute.xlu1 %1406 }
 0x6a6   : > { %v2443_v28 = vpop.eup %2442 }
 0x6a7   : > { %v1579_v29 = vmul.f32 %v2443_v28, %v2437_v17 }
 0x6a9   : > { %2099 = vst.msk [vmem:[%s3547_s6 + $0x18] sm:$0xff] %vm971_vm2, %v1579_v29 }
 0x6d0   : > { %v1223_v31 = vpop.xlane.xlu1 %1222 }
 0x6d1   : > { %2444 = vrcp.f32 %v1223_v31 }
 0x6d4   : > { %v1584_v34 = vpop.permute.xlu1 %1583 }
 0x6db   : > { %v2445_v32 = vpop.eup %2444 }
 0x6dc   : > { %v1225_v33 = vmul.f32 %v2445_v32, %v2439_v21 }
 0x6de   : > { %2091 = vst.msk [vmem:[%s3547_s6 + $0x8] sm:$0xff] %vm971_vm2, %v1225_v33  ;;  %2198 = vmatmul.mubr.msk.f32.vlgmr.msra.gmra.mrb[8].mxu1 %vm971_vm2, %v1225_v33 }
 0x6df   : > { %2206 = vmatpush3.msra.mxu1 %v1407_v30  ;;  %2207 = vmatprep.mubr.msk.f32.mxu1 %vm2949_vm0, %v2950_v1 }
 0x6e0   : > { %2215 = vmatprep.subr.mxu1 %v2950_v1 }
 0x6e2   : > { %2208 = vmatmul.mubr.msk.f32.vlgmr.msra.gmra.mrb[10].mxu1 %vm971_vm2, %v1402_v26 }
 0x6e3   : > { %2216 = vmatpush3.msra.mxu1 %v1584_v34  ;;  %2217 = vmatprep.mubr.msk.f32.mxu1 %vm2949_vm0, %v2950_v1 }
 0x6e6   : > { %2218 = vmatmul.mubr.msk.f32.vlgmr.msra.gmra.mrb[12].mxu1 %vm971_vm2, %v1579_v29 }
 0x7b1   : > { %v1301_v41 = vpop.f32.mrb[8].mxu1 }
 0x7b2   : > { %1306 = vrot.lane.b32.xlu0 %v1301_v41, %s2954_s15  ;;  %v2199_v42 = vpop.f32.mrb[9].mxu1 }
 0x7b5   : > { %v1478_v43 = vpop.f32.mrb[10].mxu1 }
 0x7b6   : > { %1483 = vrot.lane.b32.xlu1 %v1478_v43, %s2955_s9  ;;  %v2209_v1 = vpop.f32.mrb[11].mxu1 }
 0x7b9   : > { %v1655_v44 = vpop.f32.mrb[12].mxu1 }
 0x7ba   : > { %1660 = vrot.lane.b32.xlu0 %v1655_v44, %s2956_s22  ;;  %v2219_v45 = vpop.f32.mrb[13].mxu1 }
 0x824   : > { %v1307_v46 = vpop.permute.xlu0 %1306 }
 0x825   : > { %1310 = vst.msk [vmem:[#allocation4] sm:$0xff] %vm1309_vm3, %v1307_v46 }
 0x828   : > { %v1484_v0 = vpop.permute.xlu1 %1483 }
 0x829   : > { %1487 = vst.msk [vmem:[#allocation4] sm:$0xff] %vm1486_vm4, %v1484_v0 }
 0x82c   : > { %v1661_v47 = vpop.permute.xlu0 %1660 }
 0x82d   : > { %1664 = vst.msk [vmem:[#allocation4] sm:$0xff] %vm1663_vm5, %v1661_v47 }
 0x834   : > { %v1665_v48 = vld [vmem:[#allocation4] sm:$0xff] }
 0x835   : > { %2229 = vmatmul.mubr.msk.f32.vlgmr.msra.gmra.mrb[8].mxu0 %vm722_vm1, %v1665_v48 }
 0x836   : > { %2803 = shalt.err (!%p2800_p12)
}
 0x837   : > { %s2804_s1 = scalar_lea.hbm %s3595_s18, 512  ;;  %s2808_s9 = scalar_lea.hbm %s3782_s13, 1024 }
 0x838   : > { %p2805_p6 = scmp.ne.s32.totalorder %s3595_s18, %s2804_s1  ;;  %p2809_p3 = scmp.lt.u32.totalorder %s3595_s18, %s3782_s13 }
 0x839   : > { %p2810_p10 = scmp.lt.u32.totalorder %s2808_s9, %s2804_s1  ;;  %p2812_p2 = scmp.lt.u32.totalorder %s2804_s1, %s3595_s18 }
 0x83a   : > { %p2806_p9 = pnand %p2805_p6, %p3783_p4 }
 0x83b   : > { %p2811_p5 = por %p2810_p10, %p2809_p3 }
 0x83c   : > { %p2807_p0 = pneg %p2806_p9 }
 0x83d   : > { %p2813_p13 = por %p2812_p2, %p2811_p5 }
 0x83f   : > { %p2814_p1 = pnand %p2813_p13, %p2807_p0 }
 0x841   : > { %2817 = shalt.err (!%p2814_p1)
}
 0x842   : > { %s2958_s28 = smov 128   ;;  %v2101_v49 = vld [vmem:[#allocation23] ss:$0 sm:$0xff]  ;;  %s2105_s24 = sshll.u32 %s3781_s23, 7 }
 0x843   : > { %2296 = dma.vmem_to_hbm [thread:$0]  (%p3783_p4), %s3597_s0, 512, %s3595_s18, %s1757_s20, %s2958_s28, %s2958_s28, %s2954_s15  }
 0x844   : > { %s697_s12 = scalar_lea.vmem [#allocation25], %s3448_s21  ;;  %s3784_s1 = sld [smem:[#allocation53_spill]] }
 0x845   : > { %s1771_s16 = sshll.u32 %s697_s12, 4  ;;  %s1752_s15 = scalar_lea.sflag [#allocation7], %s3445_s7  ;;  %s3631_s16 = int_to_ptr.vmem [resolvable:$true] %s1771_s16 }
 0x846   : > { %s2818_s0 = scalar_lea.vmem %s3631_s16, 128  ;;  %s2959_s21 = smov [#allocation25]  }
 0x847   : > { %p2819_p11 = scmp.ne.s32.totalorder %s3631_s16, %s2818_s0  ;;  %s2822_s23 = sshll.u32 %s2959_s21, 4  ;;  %s2823_s23 = int_to_ptr.vmem [resolvable:$false] %s2822_s23 }
 0x848   : > { %s2824_s18 = scalar_lea.vmem %s2823_s23, 256  ;;  %p2825_p12 = scmp.lt.s32.totalorder %s3631_s16, %s2823_s23 }
 0x849   : > { %p2820_p7 = pnand %p2819_p11, %p3783_p4  ;;  %p2826_p6 = scmp.lt.s32.totalorder %s2824_s18, %s2818_s0 }
 0x84a   : > { %s3629_s2 = scalar_lea.hbm %s3784_s1, %s2105_s24 }
 0x84b   : > { %p2821_p8 = pneg %p2820_p7  ;;  %p2827_p9 = por %p2826_p6, %p2825_p12 }
 0x84d   : > { %p2828_p0 = pnand %p2827_p9, %p2821_p8 }
 0x908   : > { %v1746_v50 = vpop.f32.mrb[8].mxu0 }
 0x909   : > { %v1747_v51 = vadd.f32 %v2101_v49, %v1746_v50  ;;  %v2230_v52 = vpop.f32.mrb[9].mxu0 }
 0x90b   : > { %1750 = vst.msk [vmem:[%s697_s12] sm:$0xff] %vm722_vm1, %v1747_v51 }
 0x90c   : > { %2831 = shalt.err (!%p2828_p0)
}
 0x90d   : > { %s2832_s7 = scalar_lea.hbm %s3629_s2, 128  ;;  %s2836_s9 = scalar_lea.hbm %s3784_s1, 256 }
 0x90e   : > { %p2833_p3 = scmp.ne.s32.totalorder %s3629_s2, %s2832_s7  ;;  %p2837_p2 = scmp.lt.u32.totalorder %s3629_s2, %s3784_s1 }
 0x90f   : > { %p2838_p13 = scmp.lt.u32.totalorder %s2836_s9, %s2832_s7  ;;  %p2840_p11 = scmp.lt.u32.totalorder %s2832_s7, %s3629_s2 }
 0x910   : > { %p2834_p10 = pnand %p2833_p3, %p3783_p4 }
 0x911   : > { %p2839_p1 = por %p2838_p13, %p2837_p2 }
 0x912   : > { %p2835_p5 = pneg %p2834_p10 }
 0x913   : > { %p2841_p7 = por %p2840_p11, %p2839_p1 }
 0x915   : > { %p2842_p8 = pnand %p2841_p7, %p2835_p5 }
 0x917   : > { %2845 = shalt.err (!%p2842_p8)
}
 0x918   : > { %2295 = dma.vmem_to_hbm [thread:$0]  (%p3783_p4), %s3631_s16, 128, %s3629_s2, %s1752_s15  }
 0x919 PF: > { %s3785_s28 = sld [smem:[#allocation43_spill]]  ;;  %s1800_s24 = sand.u32 1, %s2912_s25  }
 0x91a   : > { %p3787_p6 = scmp.ge.s32.totalorder %s2932_s30, 2  ;;  %s1801_s12 = scalar_lea.sflag [#allocation7], %s1800_s24 }
 0x91f   : > { %p3786_p12 = scmp.ne.s32.totalorder %s3785_s28, 0 }
 0x921   : > { %p2338_p9 = pnand %p3787_p6, %p3786_p12 }
 0x923   : > { %2903 = dma.done.wait (!%p2338_p9), %s1801_s12, 128  }
 0x924   : > { %2905 = vsyncadd (!%p2338_p9), %s1801_s12, 4294967168  ;;  %s1810_s14 = scalar_lea.sflag [#allocation27], %s1800_s24 }
 0x925   : > { %2907 = dma.done.wait (!%p2338_p9), %s1810_s14, 512  }
 0x926   : > { %2909 = vsyncadd (!%p2338_p9), %s1810_s14, 4294966784  ;;  %s43_s30 = sadd.s32 1, %s2932_s30   ;;  %s3788_s3 = sld [smem:[#allocation42_spill]] }
 0x927   : > { %p40_p0 = scmp.ge.s32.totalorder %s43_s30, 4   ;;  %s3789_s28 = sld [smem:[#allocation39_spill]] }
 0x928   : > { %s3790_s29 = sld [smem:[#allocation41_spill]]  ;;  %s3791_s25 = smov %s2916_s26 }
 0x929   : > { %s3792_s26 = smov %s2920_s27  ;;  %42 = sbr.rel (!%p40_p0) target bundleno = 28 (0x1c), region = 206 }
 0x92c   : > { %s3793_s27 = smov %s3788_s3 }
 0x930   :  { %1815 = vsyncpa [#allocation6], 1 }
 0x931   :  { %1817 = vsyncpa [#allocation6 + $0x1], 1 }
 0x932   :  { %1818 = vsyncpa [#allocation9], 1 }
 0x933   :  { %1820 = vsyncpa [#allocation9 + $0x1], 1 }
 0x934   :  { %1821 = vsyncpa [#allocation12], 1 }
 0x935   :  { %1823 = vsyncpa [#allocation12 + $0x1], 1 }
 0x936   :  { %1824 = vsyncpa [#allocation15], 1 }
 0x937   :  { %1825 = vsyncpa [#allocation18], 1 }
 0x938   :  { %1826 = vsyncpa [#allocation21], 1 }
 0x939   :  { %1827 = vsyncpa [#allocation24], 1 }
 0x93a   :  { %1828 = vsyncpa [#allocation7], 1 }
 0x93b   :  { %1830 = vsyncpa [#allocation7 + $0x1], 1 }
 0x93c   :  { %1831 = vsyncpa [#allocation27], 1 }
 0x93d   :  { %1833 = vsyncpa [#allocation27 + $0x1], 1 }

</bundles_post_ra>
